<compile_context>
chip_gen: v6e
topology: v6e:2x2x1
jax: 0.10.0
libtpu: 0.0.40
codegen_flags: <defaults>
</compile_context>

<pallas_src>
import functools

import jax
import jax.numpy as jnp
from jax import lax
from jax.experimental import pallas as pl
from jax.experimental.pallas import tpu as pltpu

EPS = 1e-5  # nn.BatchNorm2d default


# ----------------------------------------------------------------------------
# Wrapper-side helpers
# ----------------------------------------------------------------------------
def _conv_band_matrices(w_hwio, W):
    """(3,3,Cin,Cout) HWIO conv weights -> (3, W*Cin, W*Cout) banded slabs.

    band[ky][(w_in, ci), (w_out, co)] = w[ky, w_in - w_out + 1, ci, co]
    for |w_in - w_out| <= 1 (else 0), so that
        out_row[y] = sum_ky  x_row[y + ky - 1] @ band[ky]
    reproduces a stride-1 / pad-1 3x3 cross-correlation.  Zero padding in W is
    folded into the band structure; padding in H is handled in-kernel.
    """
    _, _, Cin, Cout = w_hwio.shape
    wi = jnp.arange(W)[:, None]                  # w_in
    wo = jnp.arange(W)[None, :]                  # w_out
    dx = wi - wo
    kx = jnp.clip(dx + 1, 0, 2)
    valid = (jnp.abs(dx) <= 1).astype(w_hwio.dtype)
    bands = w_hwio[:, kx] * valid[None, :, :, None, None]   # (3, Win, Wout, Cin, Cout)
    bands = jnp.transpose(bands, (0, 1, 3, 2, 4))            # (3, Win, Cin, Wout, Cout)
    return bands.reshape(3, W * Cin, W * Cout)


def _pack_vec(v, W, C):
    """Per-channel vector (C,) -> lane-packed (1, W*C) f32 (hoisted broadcast)."""
    return jnp.broadcast_to(v.reshape(-1).astype(jnp.float32), (W, C)).reshape(1, W * C)


def _channel_fold_matrix(W, C):
    """(WC, WC) 0/1 matrix: row_vec @ fold == per-channel sum broadcast back to
    every (w, c) lane.  Lets the fused kernel turn per-lane sums into
    per-channel BN statistics with one tiny MXU matmul (no lane reshuffles)."""
    WC = W * C
    lane = jnp.arange(WC)
    return (lane[:, None] % C == lane[None, :] % C).astype(jnp.float32)


def _bn_scale_shift(stats, gamma, beta, W, C, n):
    """Fold per-tile [sum, sum_sq] into lane-packed BN scale/shift (tiled path)."""
    s = stats[:, 0].reshape(-1, W, C).sum(axis=(0, 1))       # (C,)
    sq = stats[:, 1].reshape(-1, W, C).sum(axis=(0, 1))      # (C,)
    mean = s / n
    var = jnp.maximum(sq / n - mean * mean, 0.0)             # biased batch var
    scale = gamma.reshape(-1) * lax.rsqrt(var + EPS)
    shift = beta.reshape(-1) - mean * scale
    return _pack_vec(scale, W, C), _pack_vec(shift, W, C)


def _vmem_limit_bytes():
    """Per-generation scoped-VMEM budget (don't hard-code the 32 MiB default)."""
    try:
        kind = jax.devices()[0].device_kind.lower()
    except Exception:
        return 32 * 1024 * 1024
    if "v7" in kind:
        return 48 * 1024 * 1024          # 64 MiB physical per TensorCore
    if any(t in kind for t in ("v4", "v5", "v6")):
        return 96 * 1024 * 1024          # 128 MiB physical
    return 32 * 1024 * 1024


def _auto_batch_tile(B, H, WC):
    """Largest batch tile whose f32 activation block stays <= ~2 MiB (tile size
    is the main throughput lever); prefer an even number of tiles so the
    "parallel" grid axis keeps both v7x TensorCores busy."""
    best = 1
    for bt in range(1, B + 1):
        if B % bt == 0 and bt * H * WC * 4 <= 2 * 1024 * 1024:
            best = bt
    if (B // best) % 2 == 1 and best % 2 == 0 and best > 1:
        best //= 2
    return best


# ----------------------------------------------------------------------------
# Kernel-side helpers
# ----------------------------------------------------------------------------
def _conv3x3_banded(x3, band_ref, compute_dtype):
    """3x3 SAME conv (stride 1) on lane-packed rows as three accumulated MXU
    matmuls, one per kernel row, against precomputed banded weight slabs.

    x3: (bt, H, W*Cin) activations.  band_ref: (3, W*Cin, W*Cout) Ref already
    in the MXU compute dtype (pre-cast in the wrapper, never per grid step).
    Returns (bt*H, W*Cout) in f32.

    W zero-padding lives in the band structure; H zero-padding is one zero row
    concatenated per image -- no 3x-wide im2col patches temp is materialized.
    NOTE: N = W*Cout (=128 in the demo) half-fills the 256-wide v6e/v7x MXU;
    for small W*C a two-output-row band (K=5*W*Cin, N=2*W*Cout) would fill it.
    """
    bt, H, WC = x3.shape
    a = x3.astype(compute_dtype)                       # single cast, before the shifts
    z = jnp.zeros((bt, 1, WC), compute_dtype)
    up = jnp.concatenate([z, a[:, :H - 1, :]], axis=1).reshape(bt * H, WC)   # row y-1
    mid = a.reshape(bt * H, WC)                                               # row y
    dn = jnp.concatenate([a[:, 1:, :], z], axis=1).reshape(bt * H, WC)        # row y+1
    y = jnp.dot(up, band_ref[0], preferred_element_type=jnp.float32)
    y = y + jnp.dot(mid, band_ref[1], preferred_element_type=jnp.float32)
    y = y + jnp.dot(dn, band_ref[2], preferred_element_type=jnp.float32)
    return y


# ----------------------------------------------------------------------------
# Fused single-kernel path (whole batch resident in VMEM)
# ----------------------------------------------------------------------------
def _fused_block_kernel(x_ref, band1_ref, band2_ref, fold_ref,
                        gamma1_ref, beta1_ref, gamma2_ref, beta2_ref,
                        out_ref, *, inv_n, compute_dtype):
    """conv1 -> BN1 -> ReLU -> conv2 -> BN2 -> +identity -> ReLU, one kernel.

    With the full batch in one block the in-kernel reductions ARE the global
    batch statistics, so training-mode BN is exact and y1/y2 never touch HBM.
    BN uses exact two-pass (mean-shifted) stats in f32.
    """
    bt, H, WC = x_ref.shape
    rows = bt * H
    x3 = x_ref[...]                                    # (B, H, WC) f32
    fold = fold_ref[...]                               # (WC, WC) channel fold matrix

    def batch_norm(y, gamma, beta):
        # per-(w,c) lane sums -> per-channel (broadcast back) via one tiny matmul
        mean = jnp.dot(jnp.sum(y, axis=0, keepdims=True), fold,
                       preferred_element_type=jnp.float32) * inv_n
        d = y - mean
        var = jnp.dot(jnp.sum(d * d, axis=0, keepdims=True), fold,
                      preferred_element_type=jnp.float32) * inv_n
        return d * (gamma * lax.rsqrt(var + EPS)) + beta

    y1 = _conv3x3_banded(x3, band1_ref, compute_dtype)              # (rows, WC) f32
    h = jnp.maximum(batch_norm(y1, gamma1_ref[...], beta1_ref[...]), 0.0)
    y2 = _conv3x3_banded(h.reshape(bt, H, WC), band2_ref, compute_dtype)
    o = batch_norm(y2, gamma2_ref[...], beta2_ref[...]) + x3.reshape(rows, WC)
    out_ref[...] = jnp.maximum(o, 0.0).reshape(bt, H, WC)


# ----------------------------------------------------------------------------
# Tiled 3-stage fallback (for shapes too big to fuse)
# ----------------------------------------------------------------------------
def _conv_stats_kernel(x_ref, band_ref, y_ref, stats_ref, *, compute_dtype):
    bt, H, WC = x_ref.shape
    y = _conv3x3_banded(x_ref[...], band_ref, compute_dtype)        # f32
    y_ref[...] = y.reshape(bt, H, WC).astype(y_ref.dtype)           # maybe bf16 to HBM
    s = jnp.sum(y, axis=0, keepdims=True)                           # stats from f32
    sq = jnp.sum(y * y, axis=0, keepdims=True)
    stats_ref[...] = jnp.concatenate([s, sq], axis=0)[None]


def _bn_relu_conv_stats_kernel(y1_ref, scale_ref, shift_ref, band_ref,
                               y2_ref, stats_ref, *, compute_dtype):
    bt, H, WC = y1_ref.shape
    h = jnp.maximum(
        y1_ref[...].astype(jnp.float32) * scale_ref[...] + shift_ref[...], 0.0)
    y = _conv3x3_banded(h, band_ref, compute_dtype)
    y2_ref[...] = y.reshape(bt, H, WC).astype(y2_ref.dtype)
    s = jnp.sum(y, axis=0, keepdims=True)
    sq = jnp.sum(y * y, axis=0, keepdims=True)
    stats_ref[...] = jnp.concatenate([s, sq], axis=0)[None]


def _bn_add_relu_kernel(y2_ref, x_ref, scale_ref, shift_ref, out_ref):
    out_ref[...] = jnp.maximum(
        y2_ref[...].astype(jnp.float32) * scale_ref[...] + shift_ref[...]
        + x_ref[...], 0.0)


# ----------------------------------------------------------------------------
# Forward pass
# ----------------------------------------------------------------------------
@functools.partial(jax.jit, static_argnames=("batch_tile", "use_bf16", "fuse"))
def basic_block_forward(x_nchw, w1, b1, g1, be1, w2, b2, g2, be2,
                        *, batch_tile=None, use_bf16=False, fuse=None):
    """BasicBlock forward.  x_nchw: (B, C, H, W) f32; conv weights in HWIO.

    Conv biases b1/b2 are accepted but dropped: training-mode BN subtracts the
    per-channel batch mean right after each conv, which cancels any
    per-channel bias exactly (re-add them for eval-mode running stats).
    use_bf16 feeds bf16 MXU operands / bf16 y1,y2 intermediates while keeping
    f32 accumulation and BN math (re-validate tolerance before enabling).
    """
    del b1, b2
    B, C, H, W = x_nchw.shape
    WC = W * C
    compute_dtype = jnp.bfloat16 if use_bf16 else jnp.float32
    vmem_limit = _vmem_limit_bytes()

    # Lane-dense packing: NCHW -> (B, H, W*C); last dim multiple of 128 at the
    # demo shape -> unmasked full-vreg stores.  (Chained blocks should keep
    # this packed layout and skip the per-block transposes.)
    x_packed = jnp.transpose(x_nchw, (0, 2, 3, 1)).reshape(B, H, WC)

    # Banded conv weights, built & cast ONCE in the wrapper.
    band1 = _conv_band_matrices(w1, W).astype(compute_dtype)
    band2 = _conv_band_matrices(w2, W).astype(compute_dtype)

    if fuse is None:
        # Fuse when the whole batch + both bands fit comfortably in VMEM.
        need = (10 * B * H * WC * 4
                + 2 * 3 * WC * WC * jnp.dtype(compute_dtype).itemsize
                + WC * WC * 4)
        fuse = need <= min(vmem_limit, 24 * 1024 * 1024)

    if fuse:
        # One kernel, no grid: at this size a single TensorCore doing zero HBM
        # round-trips beats a multi-pass / multi-core split.
        kernel = functools.partial(
            _fused_block_kernel,
            inv_n=1.0 / float(B * H * W),
            compute_dtype=compute_dtype)
        out_packed = pl.pallas_call(
            kernel,
            out_shape=jax.ShapeDtypeStruct((B, H, WC), jnp.float32),
            compiler_params=pltpu.CompilerParams(vmem_limit_bytes=vmem_limit),
        )(x_packed, band1, band2, _channel_fold_matrix(W, C),
          _pack_vec(g1, W, C), _pack_vec(be1, W, C),
          _pack_vec(g2, W, C), _pack_vec(be2, W, C))
    else:
        if batch_tile is None:
            batch_tile = _auto_batch_tile(B, H, WC)
        assert B % batch_tile == 0, "batch must be divisible by batch_tile"
        T = B // batch_tile
        n = B * H * W
        inter_dtype = jnp.bfloat16 if use_bf16 else jnp.float32  # halves y1/y2 HBM traffic

        blk_img = pl.BlockSpec((batch_tile, H, WC), lambda i: (i, 0, 0))
        # band / scale / shift are grid-invariant (constant index_map); at real
        # channel counts mark them pipeline_mode=pl.Buffered(1) (or stage them
        # into scratch) so the pipeline doesn't double-buffer invariant weights.
        blk_band = pl.BlockSpec((3, WC, WC), lambda i: (0, 0, 0))
        blk_vec = pl.BlockSpec((1, WC), lambda i: (0, 0))
        blk_stats = pl.BlockSpec((1, 2, WC), lambda i: (i, 0, 0))
        cparams = pltpu.CompilerParams(
            dimension_semantics=("parallel",),   # shards tiles across v7x's 2 TCs
            vmem_limit_bytes=vmem_limit)
        stats_shape = jax.ShapeDtypeStruct((T, 2, WC), jnp.float32)
        inter_shape = jax.ShapeDtypeStruct((B, H, WC), inter_dtype)

        # stage 1: conv1 + per-tile BN1 stats
        y1, st1 = pl.pallas_call(
            functools.partial(_conv_stats_kernel, compute_dtype=compute_dtype),
            grid=(T,),
            in_specs=[blk_img, blk_band],
            out_specs=[blk_img, blk_stats],
            out_shape=(inter_shape, stats_shape),
            compiler_params=cparams,
        )(x_packed, band1)
        scale1, shift1 = _bn_scale_shift(st1, g1, be1, W, C, n)

        # stage 2: BN1 affine + ReLU + conv2 + per-tile BN2 stats
        y2, st2 = pl.pallas_call(
            functools.partial(_bn_relu_conv_stats_kernel, compute_dtype=compute_dtype),
            grid=(T,),
            in_specs=[blk_img, blk_vec, blk_vec, blk_band],
            out_specs=[blk_img, blk_stats],
            out_shape=(inter_shape, stats_shape),
            compiler_params=cparams,
        )(y1, scale1, shift1, band2)
        scale2, shift2 = _bn_scale_shift(st2, g2, be2, W, C, n)

        # stage 3: BN2 affine + residual add + ReLU
        out_packed = pl.pallas_call(
            _bn_add_relu_kernel,
            grid=(T,),
            in_specs=[blk_img, blk_img, blk_vec, blk_vec],
            out_specs=blk_img,
            out_shape=jax.ShapeDtypeStruct((B, H, WC), jnp.float32),
            compiler_params=cparams,
        )(y2, x_packed, scale2, shift2)

    out = out_packed.reshape(B, H, W, C)
    return jnp.transpose(out, (0, 3, 1, 2))                  # NHWC -> NCHW


# ----------------------------------------------------------------------------
# Pure-JAX reference (identical semantics, including the conv biases)
# ----------------------------------------------------------------------------
def _reference_forward(x_nchw, w1, b1, g1, be1, w2, b2, g2, be2):
    x = jnp.transpose(x_nchw, (0, 2, 3, 1))
    dn = ('NHWC', 'HWIO', 'NHWC')

    def conv(xx, w, b):
        y = lax.conv_general_dilated(xx, w, (1, 1), 'SAME', dimension_numbers=dn)
        return y + b.reshape(1, 1, 1, -1)

    def bn(y, gamma, beta):
        mean = jnp.mean(y, axis=(0, 1, 2), keepdims=True)
        var = jnp.mean((y - mean) ** 2, axis=(0, 1, 2), keepdims=True)
        return (y - mean) * lax.rsqrt(var + EPS) * gamma.reshape(1, 1, 1, -1) \
            + beta.reshape(1, 1, 1, -1)

    h = jnp.maximum(bn(conv(x, w1, b1), g1, be1), 0.0)
    h = bn(conv(h, w2, b2), g2, be2)
    out = jnp.maximum(h + x, 0.0)
    return jnp.transpose(out, (0, 3, 1, 2))


if __name__ == "__main__":
    # in_channels == out_channels, stride=1, downsample=None branch.
    # W * C = 128 -> fully lane-dense packed layout.
    B, C, H, W = 8, 8, 16, 16

    key = jax.random.PRNGKey(0)
    ks = jax.random.split(key, 9)

    x = jax.random.normal(ks[0], (B, C, H, W), jnp.float32)
    w1 = 0.1 * jax.random.normal(ks[1], (3, 3, C, C), jnp.float32)   # HWIO
    b1 = 0.1 * jax.random.normal(ks[2], (C,), jnp.float32)
    g1 = 1.0 + 0.1 * jax.random.normal(ks[3], (C,), jnp.float32)
    be1 = 0.1 * jax.random.normal(ks[4], (C,), jnp.float32)
    w2 = 0.1 * jax.random.normal(ks[5], (3, 3, C, C), jnp.float32)
    b2 = 0.1 * jax.random.normal(ks[6], (C,), jnp.float32)
    g2 = 1.0 + 0.1 * jax.random.normal(ks[7], (C,), jnp.float32)
    be2 = 0.1 * jax.random.normal(ks[8], (C,), jnp.float32)

    ref = _reference_forward(x, w1, b1, g1, be1, w2, b2, g2, be2)

    # Default path: fully fused single kernel (whole batch resident in VMEM).
    out_fused = jax.block_until_ready(
        basic_block_forward(x, w1, b1, g1, be1, w2, b2, g2, be2))
    assert out_fused.shape == (B, C, H, W)
    assert float(jnp.max(jnp.abs(out_fused - ref))) < 1e-3, "fused path mismatch"

    # Tiled 3-stage pipeline (used automatically for shapes too big to fuse);
    # exercised here with an even 2-tile grid so both code paths are validated.
    out_tiled = jax.block_until_ready(
        basic_block_forward(x, w1, b1, g1, be1, w2, b2, g2, be2,
                            fuse=False, batch_tile=4))
    assert float(jnp.max(jnp.abs(out_tiled - ref))) < 1e-3, "tiled path mismatch"

    print("KERNEL_OK")
</pallas_src>

<mosaic_0001>
module attributes {stable_mosaic.version = 11 : i64} {
  func.func @_fused_block_kernel(%arg0: memref<8x16x128xf32, #tpu.memory_space<vmem>>, %arg1: memref<3x128x128xf32, #tpu.memory_space<vmem>>, %arg2: memref<3x128x128xf32, #tpu.memory_space<vmem>>, %arg3: memref<128x128xf32, #tpu.memory_space<vmem>>, %arg4: memref<1x128xf32, #tpu.memory_space<vmem>>, %arg5: memref<1x128xf32, #tpu.memory_space<vmem>>, %arg6: memref<1x128xf32, #tpu.memory_space<vmem>>, %arg7: memref<1x128xf32, #tpu.memory_space<vmem>>, %arg8: memref<8x16x128xf32, #tpu.memory_space<vmem>>) attributes {dimension_semantics = [], scalar_prefetch = 0 : i64, scratch_operands = 0 : i64, tpu.core_type = #tpu.core_type<tc>} {
    %c0 = arith.constant 0 : index
    %c0_0 = arith.constant 0 : index
    %c0_1 = arith.constant 0 : index
    %0 = vector.load %arg0[%c0, %c0_0, %c0_1] : memref<8x16x128xf32, #tpu.memory_space<vmem>>, vector<8x16x128xf32>
    %c0_2 = arith.constant 0 : index
    %c0_3 = arith.constant 0 : index
    %1 = vector.load %arg3[%c0_2, %c0_3] : memref<128x128xf32, #tpu.memory_space<vmem>>, vector<128x128xf32>
    %cst = arith.constant 0.000000e+00 : f32
    %2 = vector.broadcast %cst : f32 to vector<8x1x128xf32>
    %3 = vector.extract_strided_slice %0 {offsets = [0, 0, 0], sizes = [8, 15, 128], strides = [1, 1, 1]} : vector<8x16x128xf32> to vector<8x15x128xf32>
    %4 = tpu.concatenate %2, %3 in 1 : vector<8x1x128xf32>, vector<8x15x128xf32> -> vector<8x16x128xf32>
    %5 = vector.shape_cast %4 : vector<8x16x128xf32> to vector<128x128xf32>
    %6 = vector.shape_cast %0 : vector<8x16x128xf32> to vector<128x128xf32>
    %7 = vector.extract_strided_slice %0 {offsets = [0, 1, 0], sizes = [8, 15, 128], strides = [1, 1, 1]} : vector<8x16x128xf32> to vector<8x15x128xf32>
    %8 = tpu.concatenate %7, %2 in 1 : vector<8x15x128xf32>, vector<8x1x128xf32> -> vector<8x16x128xf32>
    %9 = vector.shape_cast %8 : vector<8x16x128xf32> to vector<128x128xf32>
    %c0_4 = arith.constant 0 : index
    %c0_5 = arith.constant 0 : index
    %c0_6 = arith.constant 0 : index
    %10 = vector.load %arg1[%c0_4, %c0_5, %c0_6] : memref<3x128x128xf32, #tpu.memory_space<vmem>>, vector<1x128x128xf32>
    %11 = vector.shape_cast %10 : vector<1x128x128xf32> to vector<128x128xf32>
    %cst_7 = arith.constant dense<0.000000e+00> : vector<128x128xf32>
    %12 = tpu.matmul %5, %11, %cst_7 {dimension_numbers = #tpu.dot_dimension_numbers<[1], [0], [0], [1], [0, 0, 1, 1], [], []>} : vector<128x128xf32>, vector<128x128xf32>, vector<128x128xf32> -> vector<128x128xf32>
    %c1 = arith.constant 1 : index
    %c0_8 = arith.constant 0 : index
    %c0_9 = arith.constant 0 : index
    %13 = vector.load %arg1[%c1, %c0_8, %c0_9] : memref<3x128x128xf32, #tpu.memory_space<vmem>>, vector<1x128x128xf32>
    %14 = vector.shape_cast %13 : vector<1x128x128xf32> to vector<128x128xf32>
    %cst_10 = arith.constant dense<0.000000e+00> : vector<128x128xf32>
    %15 = tpu.matmul %6, %14, %cst_10 {dimension_numbers = #tpu.dot_dimension_numbers<[1], [0], [0], [1], [0, 0, 1, 1], [], []>} : vector<128x128xf32>, vector<128x128xf32>, vector<128x128xf32> -> vector<128x128xf32>
    %16 = arith.addf %12, %15 : vector<128x128xf32>
    %c2 = arith.constant 2 : index
    %c0_11 = arith.constant 0 : index
    %c0_12 = arith.constant 0 : index
    %17 = vector.load %arg1[%c2, %c0_11, %c0_12] : memref<3x128x128xf32, #tpu.memory_space<vmem>>, vector<1x128x128xf32>
    %18 = vector.shape_cast %17 : vector<1x128x128xf32> to vector<128x128xf32>
    %cst_13 = arith.constant dense<0.000000e+00> : vector<128x128xf32>
    %19 = tpu.matmul %9, %18, %cst_13 {dimension_numbers = #tpu.dot_dimension_numbers<[1], [0], [0], [1], [0, 0, 1, 1], [], []>} : vector<128x128xf32>, vector<128x128xf32>, vector<128x128xf32> -> vector<128x128xf32>
    %20 = arith.addf %16, %19 : vector<128x128xf32>
    %c0_14 = arith.constant 0 : index
    %c0_15 = arith.constant 0 : index
    %21 = vector.load %arg4[%c0_14, %c0_15] : memref<1x128xf32, #tpu.memory_space<vmem>>, vector<1x128xf32>
    %c0_16 = arith.constant 0 : index
    %c0_17 = arith.constant 0 : index
    %22 = vector.load %arg5[%c0_16, %c0_17] : memref<1x128xf32, #tpu.memory_space<vmem>>, vector<1x128xf32>
    %cst_18 = arith.constant dense<0.000000e+00> : vector<128xf32>
    %23 = vector.multi_reduction <add>, %20, %cst_18 [0] : vector<128x128xf32> to vector<128xf32>
    %24 = vector.shape_cast %23 : vector<128xf32> to vector<1x128xf32>
    %cst_19 = arith.constant dense<0.000000e+00> : vector<1x128xf32>
    %25 = tpu.matmul %24, %1, %cst_19 {dimension_numbers = #tpu.dot_dimension_numbers<[1], [0], [0], [1], [0, 0, 1, 1], [], []>} : vector<1x128xf32>, vector<128x128xf32>, vector<1x128xf32> -> vector<1x128xf32>
    %cst_20 = arith.constant 4.8828125E-4 : f32
    %26 = vector.broadcast %cst_20 : f32 to vector<1x128xf32>
    %27 = arith.mulf %25, %26 : vector<1x128xf32>
    %28 = vector.broadcast %27 : vector<1x128xf32> to vector<128x128xf32>
    %29 = arith.subf %20, %28 : vector<128x128xf32>
    %30 = arith.mulf %29, %29 : vector<128x128xf32>
    %cst_21 = arith.constant dense<0.000000e+00> : vector<128xf32>
    %31 = vector.multi_reduction <add>, %30, %cst_21 [0] : vector<128x128xf32> to vector<128xf32>
    %32 = vector.shape_cast %31 : vector<128xf32> to vector<1x128xf32>
    %cst_22 = arith.constant dense<0.000000e+00> : vector<1x128xf32>
    %33 = tpu.matmul %32, %1, %cst_22 {dimension_numbers = #tpu.dot_dimension_numbers<[1], [0], [0], [1], [0, 0, 1, 1], [], []>} : vector<1x128xf32>, vector<128x128xf32>, vector<1x128xf32> -> vector<1x128xf32>
    %cst_23 = arith.constant 4.8828125E-4 : f32
    %34 = vector.broadcast %cst_23 : f32 to vector<1x128xf32>
    %35 = arith.mulf %33, %34 : vector<1x128xf32>
    %cst_24 = arith.constant 9.99999974E-6 : f32
    %36 = vector.broadcast %cst_24 : f32 to vector<1x128xf32>
    %37 = arith.addf %35, %36 : vector<1x128xf32>
    %38 = math.rsqrt %37 : vector<1x128xf32>
    %39 = arith.mulf %21, %38 : vector<1x128xf32>
    %40 = vector.broadcast %39 : vector<1x128xf32> to vector<128x128xf32>
    %41 = arith.mulf %29, %40 : vector<128x128xf32>
    %42 = vector.broadcast %22 : vector<1x128xf32> to vector<128x128xf32>
    %43 = arith.addf %41, %42 : vector<128x128xf32>
    %cst_25 = arith.constant 0.000000e+00 : f32
    %44 = vector.broadcast %cst_25 : f32 to vector<128x128xf32>
    %45 = arith.maximumf %43, %44 : vector<128x128xf32>
    %46 = vector.shape_cast %45 : vector<128x128xf32> to vector<8x16x128xf32>
    %cst_26 = arith.constant 0.000000e+00 : f32
    %47 = vector.broadcast %cst_26 : f32 to vector<8x1x128xf32>
    %48 = vector.extract_strided_slice %46 {offsets = [0, 0, 0], sizes = [8, 15, 128], strides = [1, 1, 1]} : vector<8x16x128xf32> to vector<8x15x128xf32>
    %49 = tpu.concatenate %47, %48 in 1 : vector<8x1x128xf32>, vector<8x15x128xf32> -> vector<8x16x128xf32>
    %50 = vector.shape_cast %49 : vector<8x16x128xf32> to vector<128x128xf32>
    %51 = vector.shape_cast %46 : vector<8x16x128xf32> to vector<128x128xf32>
    %52 = vector.extract_strided_slice %46 {offsets = [0, 1, 0], sizes = [8, 15, 128], strides = [1, 1, 1]} : vector<8x16x128xf32> to vector<8x15x128xf32>
    %53 = tpu.concatenate %52, %47 in 1 : vector<8x15x128xf32>, vector<8x1x128xf32> -> vector<8x16x128xf32>
    %54 = vector.shape_cast %53 : vector<8x16x128xf32> to vector<128x128xf32>
    %c0_27 = arith.constant 0 : index
    %c0_28 = arith.constant 0 : index
    %c0_29 = arith.constant 0 : index
    %55 = vector.load %arg2[%c0_27, %c0_28, %c0_29] : memref<3x128x128xf32, #tpu.memory_space<vmem>>, vector<1x128x128xf32>
    %56 = vector.shape_cast %55 : vector<1x128x128xf32> to vector<128x128xf32>
    %cst_30 = arith.constant dense<0.000000e+00> : vector<128x128xf32>
    %57 = tpu.matmul %50, %56, %cst_30 {dimension_numbers = #tpu.dot_dimension_numbers<[1], [0], [0], [1], [0, 0, 1, 1], [], []>} : vector<128x128xf32>, vector<128x128xf32>, vector<128x128xf32> -> vector<128x128xf32>
    %c1_31 = arith.constant 1 : index
    %c0_32 = arith.constant 0 : index
    %c0_33 = arith.constant 0 : index
    %58 = vector.load %arg2[%c1_31, %c0_32, %c0_33] : memref<3x128x128xf32, #tpu.memory_space<vmem>>, vector<1x128x128xf32>
    %59 = vector.shape_cast %58 : vector<1x128x128xf32> to vector<128x128xf32>
    %cst_34 = arith.constant dense<0.000000e+00> : vector<128x128xf32>
    %60 = tpu.matmul %51, %59, %cst_34 {dimension_numbers = #tpu.dot_dimension_numbers<[1], [0], [0], [1], [0, 0, 1, 1], [], []>} : vector<128x128xf32>, vector<128x128xf32>, vector<128x128xf32> -> vector<128x128xf32>
    %61 = arith.addf %57, %60 : vector<128x128xf32>
    %c2_35 = arith.constant 2 : index
    %c0_36 = arith.constant 0 : index
    %c0_37 = arith.constant 0 : index
    %62 = vector.load %arg2[%c2_35, %c0_36, %c0_37] : memref<3x128x128xf32, #tpu.memory_space<vmem>>, vector<1x128x128xf32>
    %63 = vector.shape_cast %62 : vector<1x128x128xf32> to vector<128x128xf32>
    %cst_38 = arith.constant dense<0.000000e+00> : vector<128x128xf32>
    %64 = tpu.matmul %54, %63, %cst_38 {dimension_numbers = #tpu.dot_dimension_numbers<[1], [0], [0], [1], [0, 0, 1, 1], [], []>} : vector<128x128xf32>, vector<128x128xf32>, vector<128x128xf32> -> vector<128x128xf32>
    %65 = arith.addf %61, %64 : vector<128x128xf32>
    %c0_39 = arith.constant 0 : index
    %c0_40 = arith.constant 0 : index
    %66 = vector.load %arg6[%c0_39, %c0_40] : memref<1x128xf32, #tpu.memory_space<vmem>>, vector<1x128xf32>
    %c0_41 = arith.constant 0 : index
    %c0_42 = arith.constant 0 : index
    %67 = vector.load %arg7[%c0_41, %c0_42] : memref<1x128xf32, #tpu.memory_space<vmem>>, vector<1x128xf32>
    %cst_43 = arith.constant dense<0.000000e+00> : vector<128xf32>
    %68 = vector.multi_reduction <add>, %65, %cst_43 [0] : vector<128x128xf32> to vector<128xf32>
    %69 = vector.shape_cast %68 : vector<128xf32> to vector<1x128xf32>
    %cst_44 = arith.constant dense<0.000000e+00> : vector<1x128xf32>
    %70 = tpu.matmul %69, %1, %cst_44 {dimension_numbers = #tpu.dot_dimension_numbers<[1], [0], [0], [1], [0, 0, 1, 1], [], []>} : vector<1x128xf32>, vector<128x128xf32>, vector<1x128xf32> -> vector<1x128xf32>
    %cst_45 = arith.constant 4.8828125E-4 : f32
    %71 = vector.broadcast %cst_45 : f32 to vector<1x128xf32>
    %72 = arith.mulf %70, %71 : vector<1x128xf32>
    %73 = vector.broadcast %72 : vector<1x128xf32> to vector<128x128xf32>
    %74 = arith.subf %65, %73 : vector<128x128xf32>
    %75 = arith.mulf %74, %74 : vector<128x128xf32>
    %cst_46 = arith.constant dense<0.000000e+00> : vector<128xf32>
    %76 = vector.multi_reduction <add>, %75, %cst_46 [0] : vector<128x128xf32> to vector<128xf32>
    %77 = vector.shape_cast %76 : vector<128xf32> to vector<1x128xf32>
    %cst_47 = arith.constant dense<0.000000e+00> : vector<1x128xf32>
    %78 = tpu.matmul %77, %1, %cst_47 {dimension_numbers = #tpu.dot_dimension_numbers<[1], [0], [0], [1], [0, 0, 1, 1], [], []>} : vector<1x128xf32>, vector<128x128xf32>, vector<1x128xf32> -> vector<1x128xf32>
    %cst_48 = arith.constant 4.8828125E-4 : f32
    %79 = vector.broadcast %cst_48 : f32 to vector<1x128xf32>
    %80 = arith.mulf %78, %79 : vector<1x128xf32>
    %cst_49 = arith.constant 9.99999974E-6 : f32
    %81 = vector.broadcast %cst_49 : f32 to vector<1x128xf32>
    %82 = arith.addf %80, %81 : vector<1x128xf32>
    %83 = math.rsqrt %82 : vector<1x128xf32>
    %84 = arith.mulf %66, %83 : vector<1x128xf32>
    %85 = vector.broadcast %84 : vector<1x128xf32> to vector<128x128xf32>
    %86 = arith.mulf %74, %85 : vector<128x128xf32>
    %87 = vector.broadcast %67 : vector<1x128xf32> to vector<128x128xf32>
    %88 = arith.addf %86, %87 : vector<128x128xf32>
    %89 = vector.shape_cast %0 : vector<8x16x128xf32> to vector<128x128xf32>
    %90 = arith.addf %88, %89 : vector<128x128xf32>
    %cst_50 = arith.constant 0.000000e+00 : f32
    %91 = vector.broadcast %cst_50 : f32 to vector<128x128xf32>
    %92 = arith.maximumf %90, %91 : vector<128x128xf32>
    %93 = vector.shape_cast %92 : vector<128x128xf32> to vector<8x16x128xf32>
    %c0_51 = arith.constant 0 : index
    %c0_52 = arith.constant 0 : index
    %c0_53 = arith.constant 0 : index
    %94 = vector.load %arg8[%c0_51, %c0_52, %c0_53] : memref<8x16x128xf32, #tpu.memory_space<vmem>>, vector<8x16x128xf32>
    tpu.vector_store %arg8[%c0_51, %c0_52, %c0_53], %93 {strides = array<i32>} : memref<8x16x128xf32, #tpu.memory_space<vmem>>, vector<8x16x128xf32>,
    return
  }
}

</mosaic_0001>

<bundles_post_ra>
// kernel: basic_block_forward.1
= control target key start
LH: loop header
LB: loop body
LE: loop exit
PB: predicated region body
PF: predicated region fallthrough
CT: control target
= control target key end

     0   :  { %vm77_vm0 = vcmask 1040384   ;;  %vm126_vm2 = vcmask 1046528   ;;  %vm2784_vm3 = vmmov 0   ;;  %s3921_s1 = inlined_call_operand.vmem [shape: f32[3,128,128], index: 1, kind: input, shape index: {}]   ;;  %s3922_s0 = inlined_call_operand.vmem [shape: f32[8,16,128], index: 0, kind: input, shape index: {}]   ;;  %s3923_s3 = inlined_call_operand.vmem [shape: f32[128,128], index: 3, kind: input, shape index: {}]   ;;  %s3924_s2 = inlined_call_operand.vmem [shape: f32[3,128,128], index: 2, kind: input, shape index: {}]   ;;  %s3925_s4 = inlined_call_operand.vmem [shape: f32[1,128], index: 4, kind: input, shape index: {}]   ;;  %s3926_s5 = inlined_call_operand.vmem [shape: f32[1,128], index: 5, kind: input, shape index: {}]   ;;  %s3927_s6 = inlined_call_operand.vmem [shape: f32[1,128], index: 6, kind: input, shape index: {}]   ;;  %s3928_s7 = inlined_call_operand.vmem [shape: f32[1,128], index: 7, kind: input, shape index: {}]   ;;  %s3929_s8 = inlined_call_operand.vmem [shape: f32[8,16,128], index: 8, kind: output, shape index: {}]  }
   0x1   :  { %v1910_v0 = vld [vmem:[%s3921_s1 + $0xf8] sm:$0xff]  ;;  %v1909_v2 = vld [vmem:[%s3921_s1 + $0xf0] sm:$0xff]  ;;  %v1908_v4 = vld [vmem:[%s3921_s1 + $0xe8] sm:$0xff] }
   0x2   :  { %v190_v1 = vld [vmem:[%s3921_s1 + $0x78] sm:$0xff]  ;;  %2269 = vmatprep.subr.mxu0 %v1910_v0  ;;  %v189_v3 = vld [vmem:[%s3921_s1 + $0x70] sm:$0xff]  ;;  %v188_v5 = vld [vmem:[%s3921_s1 + $0x68] sm:$0xff] }
   0x3   :  { %2325 = vmatprep.subr.mxu1 %v190_v1  ;;  %2270 = vmatpush3.msra.mxu0 %v1910_v0  ;;  %v1907_v6 = vld [vmem:[%s3921_s1 + $0xe0] sm:$0xff]  ;;  %v1906_v8 = vld [vmem:[%s3921_s1 + $0xd8] sm:$0xff]  ;;  %v1905_v10 = vld [vmem:[%s3921_s1 + $0xd0] sm:$0xff] }
   0x4   :  { %2326 = vmatpush3.msra.mxu1 %v190_v1  ;;  %2271 = vmatprep.subr.mxu0 %v1909_v2  ;;  %v187_v7 = vld [vmem:[%s3921_s1 + $0x60] sm:$0xff]  ;;  %v186_v9 = vld [vmem:[%s3921_s1 + $0x58] sm:$0xff]  ;;  %v185_v11 = vld [vmem:[%s3921_s1 + $0x50] sm:$0xff] }
   0x5   :  { %2327 = vmatprep.subr.mxu1 %v189_v3  ;;  %2272 = vmatpush3.msra.mxu0 %v1909_v2  ;;  %v1904_v12 = vld [vmem:[%s3921_s1 + $0xc8] sm:$0xff]  ;;  %v1903_v14 = vld [vmem:[%s3921_s1 + $0xc0] sm:$0xff]  ;;  %v1902_v16 = vld [vmem:[%s3921_s1 + $0xb8] sm:$0xff] }
   0x6   :  { %2328 = vmatpush3.msra.mxu1 %v189_v3  ;;  %2273 = vmatprep.subr.mxu0 %v1908_v4  ;;  %v184_v13 = vld [vmem:[%s3921_s1 + $0x48] sm:$0xff]  ;;  %v183_v15 = vld [vmem:[%s3921_s1 + $0x40] sm:$0xff]  ;;  %v182_v17 = vld [vmem:[%s3921_s1 + $0x38] sm:$0xff] }
   0x7   :  { %2329 = vmatprep.subr.mxu1 %v188_v5  ;;  %2274 = vmatpush3.msra.mxu0 %v1908_v4  ;;  %v1901_v18 = vld [vmem:[%s3921_s1 + $0xb0] sm:$0xff]  ;;  %v1900_v20 = vld [vmem:[%s3921_s1 + $0xa8] sm:$0xff]  ;;  %v1899_v22 = vld [vmem:[%s3921_s1 + $0xa0] sm:$0xff] }
   0x8   :  { %2330 = vmatpush3.msra.mxu1 %v188_v5  ;;  %2275 = vmatprep.subr.mxu0 %v1907_v6  ;;  %v181_v19 = vld [vmem:[%s3921_s1 + $0x30] sm:$0xff]  ;;  %v180_v21 = vld [vmem:[%s3921_s1 + $0x28] sm:$0xff]  ;;  %v179_v23 = vld [vmem:[%s3921_s1 + $0x20] sm:$0xff] }
   0x9   :  { %2331 = vmatprep.subr.mxu1 %v187_v7  ;;  %2276 = vmatpush3.msra.mxu0 %v1907_v6  ;;  %v1898_v24 = vld [vmem:[%s3921_s1 + $0x98] sm:$0xff]  ;;  %v1897_v26 = vld [vmem:[%s3921_s1 + $0x90] sm:$0xff]  ;;  %v2917_v28 = vld [vmem:[%s3922_s0] sm:$0xff] }
   0xa   :  { %2332 = vmatpush3.msra.mxu1 %v187_v7  ;;  %2277 = vmatprep.subr.mxu0 %v1906_v8  ;;  %v178_v25 = vld [vmem:[%s3921_s1 + $0x18] sm:$0xff]  ;;  %v177_v27 = vld [vmem:[%s3921_s1 + $0x10] sm:$0xff]  ;;  %v2922_v29 = vld [vmem:[%s3922_s0 + $0x8] sm:$0xff]  ;;  %v78_v33 = vrot.slane %v2917_v28, 7 }
   0xb   :  { %2333 = vmatprep.subr.mxu1 %v186_v9  ;;  %2278 = vmatpush3.msra.mxu0 %v1906_v8  ;;  %v1896_v30 = vld [vmem:[%s3921_s1 + $0x88] sm:$0xff]  ;;  %v1895_v32 = vld [vmem:[%s3921_s1 + $0x80] sm:$0xff]  ;;  %v79_v34 = vrot.slane %v2922_v29, 7  ;;  %v2941_v36 = vld [vmem:[%s3922_s0 + $0x10] sm:$0xff] }
   0xc   :  { %2334 = vmatpush3.msra.mxu1 %v186_v9  ;;  %2279 = vmatprep.subr.mxu0 %v1905_v10  ;;  %v176_v31 = vld [vmem:[%s3921_s1 + $0x8] sm:$0xff]  ;;  %v175_v35 = vld [vmem:[%s3921_s1] sm:$0xff]  ;;  %v2946_v37 = vld [vmem:[%s3922_s0 + $0x18] sm:$0xff]  ;;  %v81_v40 = vrot.slane %v2941_v36, 7 }
   0xd   :  { %2335 = vmatprep.subr.mxu1 %v185_v11  ;;  %2280 = vmatpush3.msra.mxu0 %v1905_v10  ;;  %vm2949_vm1 = vmneg %vm77_vm0  ;;  %v80_v39 = vsel %vm77_vm0, %v78_v33, %v79_v34  ;;  %v82_v41 = vrot.slane %v2946_v37, 7  ;;  %v1942_v42 = vld [vmem:[%s3921_s1 + $0x178] sm:$0xff]  ;;  %v2963_v43 = vld [vmem:[%s3922_s0 + $0x20] sm:$0xff] }
   0xe   :  { %2336 = vmatpush3.msra.mxu1 %v185_v11  ;;  %2281 = vmatprep.subr.mxu0 %v1904_v12  ;;  %v2968_v44 = vld [vmem:[%s3922_s0 + $0x28] sm:$0xff]  ;;  %v1941_v45 = vld [vmem:[%s3921_s1 + $0x170] sm:$0xff]  ;;  %v84_v47 = vrot.slane %v2963_v43, 7  ;;  %v2993_v51 = vld [vmem:[%s3922_s0 + $0x38] sm:$0xff] }
   0xf   :  { %2337 = vmatprep.subr.mxu1 %v184_v13  ;;  %2282 = vmatpush3.msra.mxu0 %v1904_v12  ;;  %v83_v46 = vsel %vm77_vm0, %v81_v40, %v82_v41  ;;  %v85_v48 = vrot.slane %v2968_v44, 7  ;;  %v1940_v49 = vld [vmem:[%s3921_s1 + $0x168] sm:$0xff]  ;;  %v2988_v50 = vld [vmem:[%s3922_s0 + $0x30] sm:$0xff]  ;;  %v1939_v52 = vld [vmem:[%s3921_s1 + $0x160] sm:$0xff]  ;;  %v88_v55 = vrot.slane %v2993_v51, 7 }
  0x10   :  { %2338 = vmatpush3.msra.mxu1 %v184_v13  ;;  %2283 = vmatprep.subr.mxu0 %v1903_v14  ;;  %v87_v54 = vrot.slane %v2988_v50, 7  ;;  %v1938_v56 = vld [vmem:[%s3921_s1 + $0x158] sm:$0xff]  ;;  %v3009_v57 = vld [vmem:[%s3922_s0 + $0x40] sm:$0xff]  ;;  %v3014_v58 = vld [vmem:[%s3922_s0 + $0x48] sm:$0xff]  ;;  %v136_v34 = vrot.slane %v2988_v50, 1 }
  0x11   :  { %2339 = vmatprep.subr.mxu1 %v183_v15  ;;  %2284 = vmatpush3.msra.mxu0 %v1903_v14  ;;  %v86_v53 = vsel %vm77_vm0, %v84_v47, %v85_v48  ;;  %v1937_v59 = vld [vmem:[%s3921_s1 + $0x150] sm:$0xff]  ;;  %v90_v61 = vrot.slane %v3009_v57, 7  ;;  %v91_v62 = vrot.slane %v3014_v58, 7  ;;  %v1936_v63 = vld [vmem:[%s3921_s1 + $0x148] sm:$0xff]  ;;  %v3037_v1 = vld [vmem:[%s3922_s0 + $0x58] sm:$0xff] }
  0x12   :  { %2340 = vmatpush3.msra.mxu1 %v183_v15  ;;  %2285 = vmatprep.subr.mxu0 %v1902_v16  ;;  %v89_v60 = vsel %vm77_vm0, %v87_v54, %v88_v55  ;;  %v3032_v0 = vld [vmem:[%s3922_s0 + $0x50] sm:$0xff]  ;;  %v1935_v2 = vld [vmem:[%s3921_s1 + $0x140] sm:$0xff]  ;;  %v94_v5 = vrot.slane %v3037_v1, 7  ;;  %v1934_v6 = vld [vmem:[%s3921_s1 + $0x138] sm:$0xff] }
  0x13   :  { %2341 = vmatprep.subr.mxu1 %v182_v17  ;;  %2286 = vmatpush3.msra.mxu0 %v1902_v16  ;;  %v92_v3 = vsel %vm77_vm0, %v90_v61, %v91_v62  ;;  %v93_v4 = vrot.slane %v3032_v0, 7  ;;  %v3055_v7 = vld [vmem:[%s3922_s0 + $0x60] sm:$0xff]  ;;  %v3060_v8 = vld [vmem:[%s3922_s0 + $0x68] sm:$0xff]  ;;  %v1933_v9 = vld [vmem:[%s3921_s1 + $0x130] sm:$0xff]  ;;  %v142_v41 = vrot.slane %v3032_v0, 1 }
  0x14   :  { %2342 = vmatpush3.msra.mxu1 %v182_v17  ;;  %2287 = vmatprep.subr.mxu0 %v1901_v18  ;;  %v96_v11 = vrot.slane %v3055_v7, 7  ;;  %v97_v12 = vrot.slane %v3060_v8, 7  ;;  %v1932_v13 = vld [vmem:[%s3921_s1 + $0x128] sm:$0xff]  ;;  %v3078_v14 = vld [vmem:[%s3922_s0 + $0x70] sm:$0xff]  ;;  %v3083_v15 = vld [vmem:[%s3922_s0 + $0x78] sm:$0xff] }
  0x15   :  { %2343 = vmatprep.subr.mxu1 %v181_v19  ;;  %2288 = vmatpush3.msra.mxu0 %v1901_v18  ;;  %v95_v10 = vsel %vm77_vm0, %v93_v4, %v94_v5  ;;  %v1931_v16 = vld [vmem:[%s3921_s1 + $0x120] sm:$0xff]  ;;  %v99_v18 = vrot.slane %v3078_v14, 7  ;;  %v149_v48 = vrot.slane %v3083_v15, 1  ;;  %v56_v55 = vld [vmem:[%s3923_s3 + $0x58] sm:$0xff] }
  0x16   :  { %2344 = vmatpush3.msra.mxu1 %v181_v19  ;;  %2289 = vmatprep.subr.mxu0 %v1900_v20  ;;  %v98_v17 = vsel %vm77_vm0, %v96_v11, %v97_v12  ;;  %v100_v19 = vrot.slane %v3083_v15, 7  ;;  %v49_v62 = vld [vmem:[%s3923_s3 + $0x20] sm:$0xff] }
  0x17   :  { %2345 = vmatprep.subr.mxu1 %v180_v21  ;;  %2290 = vmatpush3.msra.mxu0 %v1900_v20  ;;  %v1930_v20 = vld [vmem:[%s3921_s1 + $0x118] sm:$0xff] }
  0x18   :  { %2346 = vmatpush3.msra.mxu1 %v180_v21  ;;  %2291 = vmatprep.subr.mxu0 %v1899_v22  ;;  %v127_v21 = vrot.slane %v2917_v28, 1 }
  0x19   :  { %2347 = vmatprep.subr.mxu1 %v179_v23  ;;  %2292 = vmatpush3.msra.mxu0 %v1899_v22  ;;  %v128_v22 = vrot.slane %v2922_v29, 1 }
  0x1a   :  { %2348 = vmatpush3.msra.mxu1 %v179_v23  ;;  %2293 = vmatprep.subr.mxu0 %v1898_v24  ;;  %v1929_v23 = vld [vmem:[%s3921_s1 + $0x110] sm:$0xff] }
  0x1b   :  { %2349 = vmatprep.subr.mxu1 %v178_v25  ;;  %2294 = vmatpush3.msra.mxu0 %v1898_v24  ;;  %v101_v24 = vsel %vm77_vm0, %v99_v18, %v100_v19 }
  0x1c   :  { %2350 = vmatpush3.msra.mxu1 %v178_v25  ;;  %2295 = vmatprep.subr.mxu0 %v1897_v26  ;;  %v1928_v25 = vld [vmem:[%s3921_s1 + $0x108] sm:$0xff] }
  0x1d   :  { %2351 = vmatprep.subr.mxu1 %v177_v27  ;;  %2296 = vmatpush3.msra.mxu0 %v1897_v26  ;;  %v129_v26 = vsel %vm126_vm2, %v127_v21, %v128_v22 }
  0x1e   :  { %2352 = vmatpush3.msra.mxu1 %v177_v27  ;;  %2297 = vmatprep.subr.mxu0 %v1896_v30  ;;  %v130_v27 = vrot.slane %v2941_v36, 1 }
  0x1f   :  { %2353 = vmatprep.subr.mxu1 %v176_v31  ;;  %2298 = vmatpush3.msra.mxu0 %v1896_v30 }
  0x20   :  { %2354 = vmatpush3.msra.mxu1 %v176_v31  ;;  %2299 = vmatprep.subr.mxu0 %v1895_v32  ;;  %v133_v31 = vrot.slane %v2963_v43, 1 }
  0x21   :  { %2355 = vmatprep.subr.mxu1 %v175_v35  ;;  %2300 = vmatpush3.msra.mxu0 %v1895_v32  ;;  %v134_v32 = vrot.slane %v2968_v44, 1 }
  0x22   :  { %2301 = vmatprep.mubr.f32.mxu0 %v2917_v28  ;;  %2356 = vmatpush3.msra.mxu1 %v175_v35  ;;  %v131_v28 = vrot.slane %v2946_v37, 1  ;;  %v137_v35 = vrot.slane %v2993_v51, 1 }
  0x23   :  { %2357 = vmatprep.mubr.msk.f32.mxu1 %vm2949_vm1, %v78_v33  ;;  %2302 = vmatmul.mubr.f32.vlgmr.msra.gmra.mxu0 %v2922_v29  ;;  %v1927_v29 = vld [vmem:[%s3921_s1 + $0x100] sm:$0xff]  ;;  %v135_v33 = vsel %vm126_vm2, %v133_v31, %v134_v32 }
  0x24   :  { %2358 = vmatmul.mubr.f32.vlgmr.msra.gmra.mxu1 %v80_v39  ;;  %2381 = vmatprep.subr.mxu0 %v1942_v42  ;;  %v132_v30 = vsel %vm126_vm2, %v130_v27, %v131_v28  ;;  %v140_v39 = vrot.slane %v3014_v58, 1 }
  0x25   :  { %2304 = vmatprep.mubr.f32.mxu0 %v2941_v36  ;;  %2382 = vmatpush3.msra.mxu0 %v1942_v42  ;;  %v138_v36 = vsel %vm126_vm2, %v136_v34, %v137_v35  ;;  %v143_v42 = vrot.slane %v3037_v1, 1 }
  0x26   :  { %2360 = vmatprep.mubr.msk.f32.mxu1 %vm2949_vm1, %v81_v40  ;;  %2383 = vmatprep.subr.mxu0 %v1941_v45 }
  0x27   :  { %2384 = vmatpush3.msra.mxu0 %v1941_v45  ;;  %v146_v45 = vrot.slane %v3060_v8, 1 }
  0x28   :  { %2361 = vmatmul.mubr.f32.gmra.mxu1 %v83_v46  ;;  %2305 = vmatmul.mubr.f32.gmra.mxu0 %v2946_v37  ;;  %v139_v37 = vrot.slane %v3009_v57, 1 }
  0x29   :  { %2385 = vmatprep.subr.mxu0 %v1940_v49  ;;  %2307 = vmatprep.mubr.f32.mxu0 %v2963_v43  ;;  %v144_v43 = vsel %vm126_vm2, %v142_v41, %v143_v42 }
  0x2a   :  { %2386 = vmatpush3.msra.mxu0 %v1940_v49  ;;  %2363 = vmatprep.mubr.msk.f32.mxu1 %vm2949_vm1, %v84_v47  ;;  %v141_v40 = vsel %vm126_vm2, %v139_v37, %v140_v39  ;;  %v148_v47 = vrot.slane %v3078_v14, 1 }
  0x2b   :  { %2387 = vmatprep.subr.mxu0 %v1939_v52 }
  0x2c   :  { %2388 = vmatpush3.msra.mxu0 %v1939_v52  ;;  %2364 = vmatmul.mubr.f32.gmra.mxu1 %v86_v53  ;;  %v150_v49 = vsel %vm126_vm2, %v148_v47, %v149_v48  ;;  %v59_v52 = vld [vmem:[%s3923_s3 + $0x70] sm:$0xff]  ;;  %v58_v53 = vld [vmem:[%s3923_s3 + $0x68] sm:$0xff] }
  0x2d   :  { %2308 = vmatmul.mubr.f32.gmra.mxu0 %v2968_v44  ;;  %2389 = vmatprep.subr.mxu0 %v1938_v56  ;;  %v145_v44 = vrot.slane %v3055_v7, 1 }
  0x2e   :  { %2390 = vmatpush3.msra.mxu0 %v1938_v56  ;;  %2310 = vmatprep.mubr.f32.mxu0 %v2988_v50  ;;  %v2783_v50 = vmov 0.0   ;;  %v55_v56 = vld [vmem:[%s3923_s3 + $0x50] sm:$0xff] }
  0x2f   :  { %2391 = vmatprep.subr.mxu0 %v1937_v59  ;;  %2366 = vmatprep.mubr.msk.f32.mxu1 %vm2949_vm1, %v87_v54  ;;  %v147_v46 = vsel %vm126_vm2, %v145_v44, %v146_v45  ;;  %v57_v54 = vld [vmem:[%s3923_s3 + $0x60] sm:$0xff] }
  0x30   :  { %2392 = vmatpush3.msra.mxu0 %v1937_v59  ;;  %2367 = vmatmul.mubr.f32.gmra.mxu1 %v89_v60  ;;  %v52_v59 = vld [vmem:[%s3923_s3 + $0x38] sm:$0xff]  ;;  %v51_v60 = vld [vmem:[%s3923_s3 + $0x30] sm:$0xff] }
  0x31   :  { %2311 = vmatmul.mubr.f32.gmra.mxu0 %v2993_v51  ;;  %2393 = vmatprep.subr.mxu0 %v1936_v63  ;;  %v3151_v51 = vld [vmem:[%s3923_s3 + $0x78] sm:$0xff] }
  0x32   :  { %2394 = vmatpush3.msra.mxu0 %v1936_v63  ;;  %2313 = vmatprep.mubr.f32.mxu0 %v3009_v57  ;;  %v54_v57 = vld [vmem:[%s3923_s3 + $0x48] sm:$0xff]  ;;  %v48_v63 = vld [vmem:[%s3923_s3 + $0x18] sm:$0xff] }
  0x33   :  { %2395 = vmatprep.subr.mxu0 %v1935_v2  ;;  %2369 = vmatprep.mubr.msk.f32.mxu1 %vm2949_vm1, %v90_v61  ;;  %v50_v61 = vld [vmem:[%s3923_s3 + $0x28] sm:$0xff] }
  0x34   :  { %2396 = vmatpush3.msra.mxu0 %v1935_v2  ;;  %2370 = vmatmul.mubr.f32.gmra.mxu1 %v92_v3  ;;  %v45_v2 = vld [vmem:[%s3923_s3] sm:$0xff] }
  0x35   :  { %2314 = vmatmul.mubr.f32.gmra.mxu0 %v3014_v58  ;;  %2397 = vmatprep.subr.mxu0 %v1934_v6  ;;  %v53_v58 = vld [vmem:[%s3923_s3 + $0x40] sm:$0xff] }
  0x36   :  { %2398 = vmatpush3.msra.mxu0 %v1934_v6  ;;  %2316 = vmatprep.mubr.f32.mxu0 %v3032_v0  ;;  %v47_v0 = vld [vmem:[%s3923_s3 + $0x10] sm:$0xff] }
  0x37   :  { %2399 = vmatprep.subr.mxu0 %v1933_v9  ;;  %2372 = vmatprep.mubr.msk.f32.mxu1 %vm2949_vm1, %v93_v4 }
  0x38   :  { %2400 = vmatpush3.msra.mxu0 %v1933_v9  ;;  %2373 = vmatmul.mubr.f32.gmra.mxu1 %v95_v10 }
  0x39   :  { %2317 = vmatmul.mubr.f32.gmra.mxu0 %v3037_v1  ;;  %2401 = vmatprep.subr.mxu0 %v1932_v13  ;;  %v46_v1 = vld [vmem:[%s3923_s3 + $0x8] sm:$0xff] }
  0x3a   :  { %2402 = vmatpush3.msra.mxu0 %v1932_v13  ;;  %2319 = vmatprep.mubr.f32.mxu0 %v3055_v7 }
  0x3b   :  { %2403 = vmatprep.subr.mxu0 %v1931_v16  ;;  %2375 = vmatprep.mubr.msk.f32.mxu1 %vm2949_vm1, %v96_v11 }
  0x3c   :  { %2404 = vmatpush3.msra.mxu0 %v1931_v16  ;;  %2376 = vmatmul.mubr.f32.gmra.mxu1 %v98_v17 }
  0x3d   :  { %2320 = vmatmul.mubr.f32.gmra.mxu0 %v3060_v8  ;;  %2405 = vmatprep.subr.mxu0 %v1930_v20 }
  0x3e   :  { %2406 = vmatpush3.msra.mxu0 %v1930_v20  ;;  %2322 = vmatprep.mubr.f32.mxu0 %v3078_v14 }
  0x3f   :  { %2407 = vmatprep.subr.mxu0 %v1929_v23  ;;  %2378 = vmatprep.mubr.msk.f32.mxu1 %vm2949_vm1, %v99_v18 }
  0x40   :  { %2408 = vmatpush3.msra.mxu0 %v1929_v23  ;;  %2379 = vmatmul.mubr.f32.gmra.mxu1 %v101_v24 }
  0x41   :  { %2323 = vmatmul.mubr.f32.gmra.mxu0 %v3083_v15  ;;  %2409 = vmatprep.subr.mxu0 %v1928_v25 }
  0x42   :  { %2410 = vmatpush3.msra.mxu0 %v1928_v25  ;;  %2413 = vmatprep.mubr.f32.mxu0 %v129_v26 }
  0x43   :  { %2411 = vmatprep.subr.mxu0 %v1927_v29  ;;  %2437 = vmatprep.subr.mxu1 %v2783_v50 }
  0x44   :  { %2412 = vmatpush3.msra.mxu0 %v1927_v29  ;;  %2438 = vmatpush3.msra.mxu1 %v3151_v51 }
  0x45   :  { %2414 = vmatmul.mubr.msk.f32.vlgmr.msra.gmra.mxu0 %vm126_vm2, %v128_v22  ;;  %2472 = vmatprep.subr.mxu0 %v2783_v50 }
  0x46   :  { %2416 = vmatprep.mubr.f32.mxu0 %v132_v30  ;;  %2473 = vmatpush3.msra.mxu0 %v3151_v51 }
  0x47   :  { %2439 = vmatprep.subr.mxu1 %v2783_v50  ;;  %2474 = vmatprep.subr.mxu0 %v2783_v50 }
  0x48   :  { %2440 = vmatpush3.msra.mxu1 %v59_v52  ;;  %2475 = vmatpush3.msra.mxu0 %v59_v52 }
  0x49   :  { %2417 = vmatmul.mubr.msk.f32.gmra.mxu0 %vm126_vm2, %v131_v28  ;;  %2441 = vmatprep.subr.mxu1 %v2783_v50 }
  0x4a   :  { %2419 = vmatprep.mubr.f32.mxu0 %v135_v33  ;;  %2476 = vmatprep.subr.mxu0 %v2783_v50 }
  0x4b   :  { %2442 = vmatpush3.msra.mxu1 %v58_v53  ;;  %2477 = vmatpush3.msra.mxu0 %v58_v53 }
  0x4c   :  { %2443 = vmatprep.subr.mxu1 %v2783_v50  ;;  %2478 = vmatprep.subr.mxu0 %v2783_v50 }
  0x4d   :  { %2420 = vmatmul.mubr.msk.f32.gmra.mxu0 %vm126_vm2, %v134_v32  ;;  %2444 = vmatpush3.msra.mxu1 %v57_v54 }
  0x4e   :  { %2422 = vmatprep.mubr.f32.mxu0 %v138_v36  ;;  %2479 = vmatpush3.msra.mxu0 %v57_v54 }
  0x4f   :  { %2445 = vmatprep.subr.mxu1 %v2783_v50  ;;  %2480 = vmatprep.subr.mxu0 %v2783_v50 }
  0x50   :  { %2446 = vmatpush3.msra.mxu1 %v56_v55  ;;  %2481 = vmatpush3.msra.mxu0 %v56_v55 }
  0x51   :  { %2423 = vmatmul.mubr.msk.f32.gmra.mxu0 %vm126_vm2, %v137_v35  ;;  %2447 = vmatprep.subr.mxu1 %v2783_v50 }
  0x52   :  { %2425 = vmatprep.mubr.f32.mxu0 %v141_v40  ;;  %2482 = vmatprep.subr.mxu0 %v2783_v50 }
  0x53   :  { %2448 = vmatpush3.msra.mxu1 %v55_v56  ;;  %2483 = vmatpush3.msra.mxu0 %v55_v56 }
  0x54   :  { %2449 = vmatprep.subr.mxu1 %v2783_v50  ;;  %2484 = vmatprep.subr.mxu0 %v2783_v50 }
  0x55   :  { %2426 = vmatmul.mubr.msk.f32.gmra.mxu0 %vm126_vm2, %v140_v39  ;;  %2450 = vmatpush3.msra.mxu1 %v54_v57 }
  0x56   :  { %2428 = vmatprep.mubr.f32.mxu0 %v144_v43  ;;  %2485 = vmatpush3.msra.mxu0 %v54_v57 }
  0x57   :  { %2451 = vmatprep.subr.mxu1 %v2783_v50  ;;  %2486 = vmatprep.subr.mxu0 %v2783_v50 }
  0x58   :  { %2452 = vmatpush3.msra.mxu1 %v53_v58  ;;  %2487 = vmatpush3.msra.mxu0 %v53_v58 }
  0x59   :  { %2429 = vmatmul.mubr.msk.f32.gmra.mxu0 %vm126_vm2, %v143_v42  ;;  %2453 = vmatprep.subr.mxu1 %v2783_v50 }
  0x5a   :  { %2431 = vmatprep.mubr.f32.mxu0 %v147_v46  ;;  %2488 = vmatprep.subr.mxu0 %v2783_v50 }
  0x5b   :  { %2454 = vmatpush3.msra.mxu1 %v52_v59  ;;  %2489 = vmatpush3.msra.mxu0 %v52_v59 }
  0x5c   :  { %2455 = vmatprep.subr.mxu1 %v2783_v50  ;;  %2490 = vmatprep.subr.mxu0 %v2783_v50 }
  0x5d   :  { %2432 = vmatmul.mubr.msk.f32.gmra.mxu0 %vm126_vm2, %v146_v45  ;;  %2456 = vmatpush3.msra.mxu1 %v51_v60 }
  0x5e   :  { %2434 = vmatprep.mubr.f32.mxu0 %v150_v49  ;;  %2491 = vmatpush3.msra.mxu0 %v51_v60 }
  0x5f   :  { %2457 = vmatprep.subr.mxu1 %v2783_v50  ;;  %2492 = vmatprep.subr.mxu0 %v2783_v50 }
  0x60   :  { %2458 = vmatpush3.msra.mxu1 %v50_v61  ;;  %2493 = vmatpush3.msra.mxu0 %v50_v61 }
  0x61   :  { %2435 = vmatmul.mubr.msk.f32.gmra.mxu0 %vm126_vm2, %v149_v48  ;;  %2459 = vmatprep.subr.mxu1 %v2783_v50 }
  0x62   :  { %2494 = vmatprep.subr.mxu0 %v2783_v50  ;;  %2460 = vmatpush3.msra.mxu1 %v49_v62 }
  0x63   :  { %2495 = vmatpush3.msra.mxu0 %v49_v62  ;;  %2461 = vmatprep.subr.mxu1 %v2783_v50 }
  0x64   :  { %2496 = vmatprep.subr.mxu0 %v2783_v50  ;;  %2462 = vmatpush3.msra.mxu1 %v48_v63 }
  0x65   :  { %2497 = vmatpush3.msra.mxu0 %v48_v63  ;;  %2463 = vmatprep.subr.mxu1 %v2783_v50 }
  0x66   :  { %2498 = vmatprep.subr.mxu0 %v2783_v50  ;;  %2464 = vmatpush3.msra.mxu1 %v47_v0 }
  0x67   :  { %2499 = vmatpush3.msra.mxu0 %v47_v0  ;;  %2465 = vmatprep.subr.mxu1 %v2783_v50 }
  0x68   :  { %2500 = vmatprep.subr.mxu0 %v2783_v50  ;;  %2466 = vmatpush3.msra.mxu1 %v46_v1 }
  0x69   :  { %2501 = vmatpush3.msra.mxu0 %v46_v1  ;;  %2467 = vmatprep.subr.mxu1 %v2783_v50 }
  0x6a   :  { %2502 = vmatprep.subr.mxu0 %v2783_v50  ;;  %2468 = vmatpush3.msra.mxu1 %v45_v2 }
  0x6b   :  { %2469 = vmatprep.mubr.msk.f32.mxu1 %vm2784_vm3, %v2783_v50  ;;  %2503 = vmatpush3.msra.mxu0 %v45_v2 }
  0x6c   :  { %2504 = vmatprep.mubr.msk.f32.mxu0 %vm2784_vm3, %v2783_v50 }
  0xe3   :  { %v2303_v3 = vpop.f32.mrf.mxu0 }
  0xe4   :  { %v2359_v4 = vpop.f32.mrf.mxu1 }
  0xe5   :  { %v274_v5 = vpop.f32.mrf.mxu0  ;;  %v425_v32 = vadd.f32 %v2359_v4, %v2303_v3 }
  0xe6   :  { %v419_v6 = vpop.f32.mrf.mxu1 }
  0xe7   :  { %v420_v29 = vadd.f32 %v419_v6, %v274_v5 }
  0xe8   :  { %v2306_v7 = vpop.f32.mrf.mxu0  ;;  %v2362_v8 = vpop.f32.mrf.mxu1 }
  0xe9   :  { %v435_v40 = vadd.f32 %v2362_v8, %v2306_v7 }
  0xea   :  { %v284_v9 = vpop.f32.mrf.mxu0  ;;  %v429_v11 = vpop.f32.mrf.mxu1 }
  0xeb   :  { %v430_v35 = vadd.f32 %v429_v11, %v284_v9 }
  0xec   :  { %v2365_v14 = vpop.f32.mrf.mxu1 }
  0xed   :  { %v2309_v10 = vpop.f32.mrf.mxu0 }
  0xee   :  { %v439_v17 = vpop.f32.mrf.mxu1  ;;  %v445_v49 = vadd.f32 %v2365_v14, %v2309_v10 }
  0xef   :  { %v294_v12 = vpop.f32.mrf.mxu0 }
  0xf0   :  { %v2368_v20 = vpop.f32.mrf.mxu1  ;;  %v440_v44 = vadd.f32 %v439_v17, %v294_v12 }
  0xf1   :  { %v2312_v13 = vpop.f32.mrf.mxu0 }
  0xf2   :  { %v449_v23 = vpop.f32.mrf.mxu1  ;;  %v455_v60 = vadd.f32 %v2368_v20, %v2312_v13 }
  0xf3   :  { %v304_v15 = vpop.f32.mrf.mxu0 }
  0xf4   :  { %v2371_v26 = vpop.f32.mrf.mxu1  ;;  %v450_v55 = vadd.f32 %v449_v23, %v304_v15 }
  0xf5   :  { %v2315_v16 = vpop.f32.mrf.mxu0 }
  0xf6   :  { %v459_v30 = vpop.f32.mrf.mxu1  ;;  %v465_v5 = vadd.f32 %v2371_v26, %v2315_v16 }
  0xf7   :  { %v314_v18 = vpop.f32.mrf.mxu0 }
  0xf8   :  { %v2374_v37 = vpop.f32.mrf.mxu1  ;;  %v460_v0 = vadd.f32 %v459_v30, %v314_v18 }
  0xf9   :  { %v2318_v19 = vpop.f32.mrf.mxu0 }
  0xfa   :  { %v469_v47 = vpop.f32.mrf.mxu1  ;;  %v475_v14 = vadd.f32 %v2374_v37, %v2318_v19 }
  0xfb   :  { %v324_v21 = vpop.f32.mrf.mxu0 }
  0xfc   :  { %v2377_v58 = vpop.f32.mrf.mxu1  ;;  %v470_v9 = vadd.f32 %v469_v47, %v324_v21 }
  0xfd   :  { %v2321_v22 = vpop.f32.mrf.mxu0 }
  0xfe   :  { %v479_v3 = vpop.f32.mrf.mxu1  ;;  %v485_v21 = vadd.f32 %v2377_v58, %v2321_v22 }
  0xff   :  { %v334_v24 = vpop.f32.mrf.mxu0 }
 0x100   :  { %v2380_v12 = vpop.f32.mrf.mxu1  ;;  %v480_v20 = vadd.f32 %v479_v3, %v334_v24 }
 0x101   :  { %v3235_v25 = vpop.f32.mrf.mxu0 }
 0x102   :  { %v489_v26 = vpop.f32.mrf.mxu1  ;;  %v495_v37 = vadd.f32 %v2380_v12, %v3235_v25 }
 0x103   :  { %v344_v27 = vpop.f32.mrf.mxu0 }
 0x105   :  { %v2415_v28 = vpop.f32.mrf.mxu0 }
 0x106   :  { %v3239_v36 = vadd.f32 %v2415_v28, %v425_v32  ;;  %v490_v32 = vadd.f32 %v489_v26, %v344_v27  ;;  %v1967_v27 = vld [vmem:[%s3924_s2 + $0xf8] sm:$0xff] }
 0x107   :  { %v581_v31 = vpop.f32.mrf.mxu0  ;;  %2507 = vmatprep.subr.mxu1 %v1967_v27 }
 0x108   :  { %v3237_v33 = vadd.f32 %v581_v31, %v420_v29 }
 0x109   :  { %v2418_v34 = vpop.f32.mrf.mxu0 }
 0x10a   :  { %v678_v41 = vadd.f32 %v3239_v36, %v3237_v33  ;;  %v3245_v45 = vadd.f32 %v2418_v34, %v435_v40 }
 0x10b   :  { %v591_v39 = vpop.f32.mrf.mxu0 }
 0x10c   :  { %v3243_v42 = vadd.f32 %v591_v39, %v430_v35 }
 0x10d   :  { %v2421_v43 = vpop.f32.mrf.mxu0 }
 0x10e   :  { %v679_v46 = vadd.f32 %v678_v41, %v3243_v42  ;;  %v3251_v56 = vadd.f32 %v2421_v43, %v445_v49 }
 0x10f   :  { %v601_v48 = vpop.f32.mrf.mxu0 }
 0x110   :  { %v3248_v52 = vadd.f32 %v601_v48, %v440_v44  ;;  %v680_v53 = vadd.f32 %v679_v46, %v3245_v45 }
 0x111   :  { %v2424_v54 = vpop.f32.mrf.mxu0 }
 0x112   :  { %v681_v57 = vadd.f32 %v680_v53, %v3248_v52  ;;  %v3257_v1 = vadd.f32 %v2424_v54, %v455_v60  ;;  %v770_v53 = vlaneseq }
 0x113   :  { %v611_v59 = vpop.f32.mrf.mxu0 }
 0x114   :  { %v3254_v61 = vadd.f32 %v611_v59, %v450_v55  ;;  %v682_v62 = vadd.f32 %v681_v57, %v3251_v56  ;;  %v771_v25 = vshrl.u32 %v770_v53, 7  ;;  %v1088_v53 = vld [vmem:[%s3924_s2 + $0x78] sm:$0xff] }
 0x115   :  { %v2427_v63 = vpop.f32.mrf.mxu0  ;;  %2563 = vmatprep.subr.mxu0 %v1088_v53 }
 0x116   :  { %v683_v2 = vadd.f32 %v682_v62, %v3254_v61  ;;  %v3263_v10 = vadd.f32 %v2427_v63, %v465_v5  ;;  %v3277_v54 = vsub.s32 0, %v771_v25  ;;  %v1965_v25 = vld [vmem:[%s3924_s2 + $0xe8] sm:$0xff] }
 0x117   :  { %v621_v4 = vpop.f32.mrf.mxu0 }
 0x118   :  { %v3260_v6 = vadd.f32 %v621_v4, %v460_v0  ;;  %v684_v7 = vadd.f32 %v683_v2, %v3257_v1 }
 0x119   :  { %v2430_v8 = vpop.f32.mrf.mxu0 }
 0x11a   :  { %v685_v11 = vadd.f32 %v684_v7, %v3260_v6  ;;  %v3269_v16 = vadd.f32 %v2430_v8, %v475_v14 }
 0x11b   :  { %v631_v13 = vpop.f32.mrf.mxu0 }
 0x11c   :  { %v3266_v15 = vadd.f32 %v631_v13, %v470_v9  ;;  %v686_v17 = vadd.f32 %v685_v11, %v3263_v10 }
 0x11d   :  { %v2433_v18 = vpop.f32.mrf.mxu0 }
 0x11e   :  { %v687_v23 = vadd.f32 %v686_v17, %v3266_v15  ;;  %v673_v34 = vadd.f32 %v2433_v18, %v485_v21 }
 0x11f   :  { %v641_v28 = vpop.f32.mrf.mxu0 }
 0x120   :  { %v672_v29 = vadd.f32 %v641_v28, %v480_v20  ;;  %v688_v30 = vadd.f32 %v687_v23, %v3269_v16 }
 0x121   :  { %v2436_v31 = vpop.f32.mrf.mxu0 }
 0x122   :  { %v689_v19 = vadd.f32 %v688_v30, %v672_v29  ;;  %v675_v24 = vadd.f32 %v2436_v31, %v495_v37 }
 0x123   :  { %v651_v35 = vpop.f32.mrf.mxu0 }
 0x124   :  { %v674_v39 = vadd.f32 %v651_v35, %v490_v32  ;;  %v690_v40 = vadd.f32 %v689_v19, %v673_v34 }
 0x126   :  { %v691_v41 = vadd.f32 %v690_v40, %v674_v39 }
 0x128   :  { %v692_v43 = vadd.f32 %v691_v41, %v675_v24 }
 0x12a   :  { %v693_v44 = vrot.slane %v692_v43, 4 }
 0x12c   :  { %v694_v46 = vadd.f32 %v693_v44, %v692_v43 }
 0x12e   :  { %v695_v47 = vrot.slane %v694_v46, 2 }
 0x130   :  { %v696_v48 = vadd.f32 %v695_v47, %v694_v46 }
 0x132   :  { %v697_v22 = vrot.slane %v696_v48, 1 }
 0x134   :  { %v698_v49 = vadd.f32 %v697_v22, %v696_v48 }
 0x136   :  { %2470 = vmatmul.mubr.f32.vlgmr.msra.gmra.mxu1 %v698_v49 }
 0x137   :  { %2508 = vmatpush3.msra.mxu1 %v1967_v27  ;;  %v1966_v27 = vld [vmem:[%s3924_s2 + $0xf0] sm:$0xff] }
 0x138   :  { %2509 = vmatprep.subr.mxu1 %v1966_v27 }
 0x139   :  { %2510 = vmatpush3.msra.mxu1 %v1966_v27 }
 0x13a   :  { %2511 = vmatprep.subr.mxu1 %v1965_v25 }
 0x13b   :  { %2512 = vmatpush3.msra.mxu1 %v1965_v25 }
 0x1f6   :  { %v765_v55 = vpop.f32.mrf.mxu1 }
 0x1f7   :  { %v769_v57 = vmul.f32 0.00048828125, %v765_v55  ;;  %v1087_v55 = vld [vmem:[%s3924_s2 + $0x70] sm:$0xff] }
 0x1f8   :  { %v2471_v58 = vpop.f32.mrf.mxu1 }
 0x1f9   :  { %v773_v59 = vrot.slane %v769_v57, %v3277_v54  ;;  %v1964_v57 = vld [vmem:[%s3924_s2 + $0xe0] sm:$0xff]  ;;  %v1086_v58 = vld [vmem:[%s3924_s2 + $0x68] sm:$0xff] }
 0x1fa   :  { %2513 = vmatprep.subr.mxu1 %v1964_v57 }
 0x1fb   :  { %v3281_v60 = vsub.f32 %v3237_v33, %v773_v59  ;;  %v3284_v62 = vsub.f32 %v3239_v36, %v773_v59  ;;  %v3287_v63 = vsub.f32 %v3243_v42, %v773_v59  ;;  %v3294_v3 = vsub.f32 %v3245_v45, %v773_v59  ;;  %2514 = vmatpush3.msra.mxu1 %v1964_v57 }
 0x1fc   :  { %v3297_v4 = vsub.f32 %v3248_v52, %v773_v59  ;;  %v3302_v5 = vsub.f32 %v3251_v56, %v773_v59  ;;  %v3307_v8 = vsub.f32 %v3254_v61, %v773_v59  ;;  %v3312_v52 = vsub.f32 %v3257_v1, %v773_v59 }
 0x1fd   :  { %v790_v0 = vmul.f32 %v3281_v60, %v3281_v60  ;;  %v791_v2 = vmul.f32 %v3284_v62, %v3284_v62  ;;  %v792_v33 = vmul.f32 %v3287_v63, %v3287_v63  ;;  %v793_v42 = vmul.f32 %v3294_v3, %v3294_v3 }
 0x1fe   :  { %v794_v45 = vmul.f32 %v3297_v4, %v3297_v4  ;;  %v795_v11 = vmul.f32 %v3302_v5, %v3302_v5  ;;  %v3317_v56 = vsub.f32 %v3260_v6, %v773_v59  ;;  %v796_v13 = vmul.f32 %v3307_v8, %v3307_v8 }
 0x1ff   :  { %v806_v36 = vadd.f32 %v791_v2, %v790_v0  ;;  %v3322_v61 = vsub.f32 %v3263_v10, %v773_v59  ;;  %v797_v17 = vmul.f32 %v3312_v52, %v3312_v52  ;;  %v3327_v1 = vsub.f32 %v3266_v15, %v773_v59  ;;  %v1085_v0 = vld [vmem:[%s3924_s2 + $0x60] sm:$0xff]  ;;  %v1962_v2 = vld [vmem:[%s3924_s2 + $0xd0] sm:$0xff] }
 0x200   :  { %v798_v20 = vmul.f32 %v3317_v56, %v3317_v56  ;;  %v3332_v6 = vsub.f32 %v3269_v16, %v773_v59  ;;  %v3336_v10 = vsub.f32 %v672_v29, %v773_v59  ;;  %v3340_v31 = vsub.f32 %v673_v34, %v773_v59 }
 0x201   :  { %v807_v7 = vadd.f32 %v806_v36, %v792_v33  ;;  %v799_v26 = vmul.f32 %v3322_v61, %v3322_v61  ;;  %v800_v21 = vmul.f32 %v3327_v1, %v3327_v1  ;;  %v3344_v19 = vsub.f32 %v674_v39, %v773_v59  ;;  %v1084_v33 = vld [vmem:[%s3924_s2 + $0x58] sm:$0xff]  ;;  %v1961_v36 = vld [vmem:[%s3924_s2 + $0xc8] sm:$0xff] }
 0x202   :  { %v801_v15 = vmul.f32 %v3332_v6, %v3332_v6  ;;  %v802_v16 = vmul.f32 %v3336_v10, %v3336_v10  ;;  %v3348_v37 = vsub.f32 %v675_v24, %v773_v59  ;;  %v803_v29 = vmul.f32 %v3340_v31, %v3340_v31  ;;  %v1963_v59 = vld [vmem:[%s3924_s2 + $0xd8] sm:$0xff] }
 0x203   :  { %v808_v9 = vadd.f32 %v807_v7, %v793_v42  ;;  %v804_v34 = vmul.f32 %v3344_v19, %v3344_v19  ;;  %2515 = vmatprep.subr.mxu1 %v1963_v59  ;;  %v1083_v42 = vld [vmem:[%s3924_s2 + $0x50] sm:$0xff]  ;;  %v1960_v7 = vld [vmem:[%s3924_s2 + $0xc0] sm:$0xff] }
 0x204   :  { %v805_v43 = vmul.f32 %v3348_v37, %v3348_v37  ;;  %2516 = vmatpush3.msra.mxu1 %v1963_v59 }
 0x205   :  { %v809_v12 = vadd.f32 %v808_v9, %v794_v45  ;;  %2517 = vmatprep.subr.mxu1 %v1962_v2  ;;  %v1082_v45 = vld [vmem:[%s3924_s2 + $0x48] sm:$0xff]  ;;  %v1959_v9 = vld [vmem:[%s3924_s2 + $0xb8] sm:$0xff] }
 0x206   :  { %2518 = vmatpush3.msra.mxu1 %v1962_v2 }
 0x207   :  { %v810_v14 = vadd.f32 %v809_v12, %v795_v11  ;;  %2519 = vmatprep.subr.mxu1 %v1961_v36  ;;  %v1081_v11 = vld [vmem:[%s3924_s2 + $0x40] sm:$0xff]  ;;  %v1958_v12 = vld [vmem:[%s3924_s2 + $0xb0] sm:$0xff] }
 0x208   :  { %2520 = vmatpush3.msra.mxu1 %v1961_v36 }
 0x209   :  { %v811_v18 = vadd.f32 %v810_v14, %v796_v13  ;;  %2521 = vmatprep.subr.mxu1 %v1960_v7  ;;  %v1080_v13 = vld [vmem:[%s3924_s2 + $0x38] sm:$0xff]  ;;  %v1957_v14 = vld [vmem:[%s3924_s2 + $0xa8] sm:$0xff] }
 0x20a   :  { %2522 = vmatpush3.msra.mxu1 %v1960_v7 }
 0x20b   :  { %v812_v23 = vadd.f32 %v811_v18, %v797_v17  ;;  %2523 = vmatprep.subr.mxu1 %v1959_v9  ;;  %v1079_v17 = vld [vmem:[%s3924_s2 + $0x30] sm:$0xff]  ;;  %v1956_v18 = vld [vmem:[%s3924_s2 + $0xa0] sm:$0xff] }
 0x20c   :  { %2524 = vmatpush3.msra.mxu1 %v1959_v9 }
 0x20d   :  { %v813_v28 = vadd.f32 %v812_v23, %v798_v20  ;;  %2525 = vmatprep.subr.mxu1 %v1958_v12  ;;  %v1078_v20 = vld [vmem:[%s3924_s2 + $0x28] sm:$0xff]  ;;  %v1955_v23 = vld [vmem:[%s3924_s2 + $0x98] sm:$0xff] }
 0x20e   :  { %2526 = vmatpush3.msra.mxu1 %v1958_v12 }
 0x20f   :  { %v814_v30 = vadd.f32 %v813_v28, %v799_v26  ;;  %2527 = vmatprep.subr.mxu1 %v1957_v14  ;;  %v1077_v26 = vld [vmem:[%s3924_s2 + $0x20] sm:$0xff]  ;;  %v1954_v28 = vld [vmem:[%s3924_s2 + $0x90] sm:$0xff] }
 0x210   :  { %2528 = vmatpush3.msra.mxu1 %v1957_v14 }
 0x211   :  { %v815_v32 = vadd.f32 %v814_v30, %v800_v21  ;;  %2529 = vmatprep.subr.mxu1 %v1956_v18  ;;  %v1076_v21 = vld [vmem:[%s3924_s2 + $0x18] sm:$0xff]  ;;  %v1953_v30 = vld [vmem:[%s3924_s2 + $0x88] sm:$0xff] }
 0x212   :  { %2530 = vmatpush3.msra.mxu1 %v1956_v18 }
 0x213   :  { %v816_v35 = vadd.f32 %v815_v32, %v801_v15  ;;  %2531 = vmatprep.subr.mxu1 %v1955_v23  ;;  %v1075_v15 = vld [vmem:[%s3924_s2 + $0x10] sm:$0xff]  ;;  %v1952_v32 = vld [vmem:[%s3924_s2 + $0x80] sm:$0xff] }
 0x214   :  { %2532 = vmatpush3.msra.mxu1 %v1955_v23 }
 0x215   :  { %v817_v40 = vadd.f32 %v816_v35, %v802_v16  ;;  %2533 = vmatprep.subr.mxu1 %v1954_v28  ;;  %v1074_v16 = vld [vmem:[%s3924_s2 + $0x8] sm:$0xff]  ;;  %v1073_v35 = vld [vmem:[%s3924_s2] sm:$0xff] }
 0x216   :  { %2534 = vmatpush3.msra.mxu1 %v1954_v28 }
 0x217   :  { %v818_v41 = vadd.f32 %v817_v40, %v803_v29  ;;  %2535 = vmatprep.subr.mxu1 %v1953_v30  ;;  %v1999_v29 = vld [vmem:[%s3924_s2 + $0x178] sm:$0xff] }
 0x218   :  { %2536 = vmatpush3.msra.mxu1 %v1953_v30 }
 0x219   :  { %v819_v44 = vadd.f32 %v818_v41, %v804_v34  ;;  %2537 = vmatprep.subr.mxu1 %v1952_v32 }
 0x21a   :  { %2538 = vmatpush3.msra.mxu1 %v1952_v32 }
 0x21b   :  { %v820_v39 = vadd.f32 %v819_v44, %v805_v43  ;;  %2619 = vmatprep.subr.mxu1 %v1999_v29  ;;  %v676_v44 = vld [vmem:[%s3925_s4] sm:$0x1] }
 0x21d   :  { %v821_v46 = vrot.slane %v820_v39, 4 }
 0x21f   :  { %v822_v47 = vadd.f32 %v821_v46, %v820_v39 }
 0x221   :  { %v823_v48 = vrot.slane %v822_v47, 2 }
 0x223   :  { %v824_v22 = vadd.f32 %v823_v48, %v822_v47  ;;  %v3462_v48 = vld [vmem:[%s3926_s5] ss:$0 sm:$0xff] }
 0x225   :  { %v825_v49 = vrot.slane %v824_v22, 1 }
 0x227   :  { %v826_v24 = vadd.f32 %v825_v49, %v824_v22 }
 0x229   :  { %2505 = vmatmul.mubr.f32.vlgmr.msra.gmra.mxu0 %v826_v24 }
 0x22a   :  { %2564 = vmatpush3.msra.mxu0 %v1088_v53 }
 0x22b   :  { %2565 = vmatprep.subr.mxu0 %v1087_v55 }
 0x22c   :  { %2566 = vmatpush3.msra.mxu0 %v1087_v55 }
 0x22d   :  { %2567 = vmatprep.subr.mxu0 %v1086_v58 }
 0x22e   :  { %2568 = vmatpush3.msra.mxu0 %v1086_v58 }
 0x22f   :  { %2569 = vmatprep.subr.mxu0 %v1085_v0 }
 0x230   :  { %2570 = vmatpush3.msra.mxu0 %v1085_v0 }
 0x231   :  { %2571 = vmatprep.subr.mxu0 %v1084_v33 }
 0x232   :  { %2572 = vmatpush3.msra.mxu0 %v1084_v33 }
 0x233   :  { %2573 = vmatprep.subr.mxu0 %v1083_v42 }
 0x234   :  { %2574 = vmatpush3.msra.mxu0 %v1083_v42 }
 0x235   :  { %2575 = vmatprep.subr.mxu0 %v1082_v45 }
 0x236   :  { %2576 = vmatpush3.msra.mxu0 %v1082_v45 }
 0x237   :  { %2577 = vmatprep.subr.mxu0 %v1081_v11 }
 0x238   :  { %2578 = vmatpush3.msra.mxu0 %v1081_v11 }
 0x239   :  { %2579 = vmatprep.subr.mxu0 %v1080_v13 }
 0x23a   :  { %2580 = vmatpush3.msra.mxu0 %v1080_v13  ;;  %v1997_v13 = vld [vmem:[%s3924_s2 + $0x168] sm:$0xff] }
 0x23b   :  { %2581 = vmatprep.subr.mxu0 %v1079_v17 }
 0x23c   :  { %2582 = vmatpush3.msra.mxu0 %v1079_v17 }
 0x23d   :  { %2583 = vmatprep.subr.mxu0 %v1078_v20 }
 0x23e   :  { %2584 = vmatpush3.msra.mxu0 %v1078_v20 }
 0x23f   :  { %2585 = vmatprep.subr.mxu0 %v1077_v26 }
 0x240   :  { %2586 = vmatpush3.msra.mxu0 %v1077_v26 }
 0x241   :  { %2587 = vmatprep.subr.mxu0 %v1076_v21 }
 0x242   :  { %2588 = vmatpush3.msra.mxu0 %v1076_v21 }
 0x243   :  { %2589 = vmatprep.subr.mxu0 %v1075_v15 }
 0x244   :  { %2590 = vmatpush3.msra.mxu0 %v1075_v15 }
 0x245   :  { %2591 = vmatprep.subr.mxu0 %v1074_v16 }
 0x246   :  { %2592 = vmatpush3.msra.mxu0 %v1074_v16 }
 0x247   :  { %2593 = vmatprep.subr.mxu0 %v1073_v35 }
 0x248   :  { %2594 = vmatpush3.msra.mxu0 %v1073_v35 }
 0x249   :  { %2675 = vmatprep.subr.mxu0 %v2783_v50 }
 0x2e9   :  { %v893_v40 = vpop.f32.mrf.mxu0 }
 0x2ea   :  { %v897_v34 = vmul.f32 0.00048828125, %v893_v40  ;;  %v1993_v40 = vld [vmem:[%s3924_s2 + $0x148] sm:$0xff] }
 0x2eb   :  { %v2506_v41 = vpop.f32.mrf.mxu0 }
 0x2ec   :  { %v898_v43 = vadd.f32 1e-05, %v897_v34 }
 0x2ee   :  { %2747 = vrsqrt.f32 %v898_v43 }
 0x2fb   :  { %v2748_v39 = vpop.eup %2747 }
 0x2fc   :  { %v900_v46 = vmul.f32 %v2748_v39, %v676_v44 }
 0x2fe   :  { %v3457_v47 = vrot.slane %v900_v46, %v3277_v54  ;;  %v1992_v46 = vld [vmem:[%s3924_s2 + $0x140] sm:$0xff] }
 0x300   :  { %v907_v22 = vmul.f32 %v3457_v47, %v3281_v60  ;;  %v908_v49 = vmul.f32 %v3457_v47, %v3284_v62  ;;  %v909_v24 = vmul.f32 %v3457_v47, %v3287_v63  ;;  %v910_v27 = vmul.f32 %v3457_v47, %v3294_v3 }
 0x301   :  { %v911_v53 = vmul.f32 %v3457_v47, %v3297_v4  ;;  %v912_v25 = vmul.f32 %v3457_v47, %v3302_v5  ;;  %v913_v63 = vmul.f32 %v3457_v47, %v3307_v8  ;;  %v914_v3 = vmul.f32 %v3457_v47, %v3312_v52  ;;  %v1998_v8 = vld [vmem:[%s3924_s2 + $0x170] sm:$0xff] }
 0x302   :  { %v929_v55 = vadd.f32 %v3462_v48, %v907_v22  ;;  %v930_v57 = vadd.f32 %v3462_v48, %v908_v49  ;;  %v931_v60 = vadd.f32 %v3462_v48, %v909_v24  ;;  %v932_v62 = vadd.f32 %v3462_v48, %v910_v27  ;;  %v1991_v24 = vld [vmem:[%s3924_s2 + $0x138] sm:$0xff] }
 0x303   :  { %v933_v58 = vadd.f32 %v3462_v48, %v911_v53  ;;  %v934_v0 = vadd.f32 %v3462_v48, %v912_v25  ;;  %v935_v42 = vadd.f32 %v3462_v48, %v913_v63  ;;  %v936_v7 = vadd.f32 %v3462_v48, %v914_v3 }
 0x304   :  { %v3485_v4 = vmax.f32 %v929_v55, 0.0  ;;  %v3487_v59 = vmax.f32 %v930_v57, 0.0  ;;  %v3489_v5 = vmax.f32 %v931_v60, 0.0  ;;  %v3492_v2 = vmax.f32 %v932_v62, 0.0  ;;  %v1989_v62 = vld [vmem:[%s3924_s2 + $0x128] sm:$0xff] }
 0x305   :  { %v3501_v52 = vmax.f32 %v933_v58, 0.0  ;;  %v3510_v11 = vmax.f32 %v934_v0, 0.0  ;;  %v915_v12 = vmul.f32 %v3457_v47, %v3317_v56  ;;  %v916_v17 = vmul.f32 %v3457_v47, %v3322_v61  ;;  %v1996_v56 = vld [vmem:[%s3924_s2 + $0x160] sm:$0xff] }
 0x306   :  { %2539 = vmatprep.mubr.f32.mxu1 %v3485_v4  ;;  %v977_v33 = vrot.slane %v3485_v4, 7  ;;  %v978_v36 = vrot.slane %v3487_v59, 7  ;;  %v980_v9 = vrot.slane %v3489_v5, 7  ;;  %v981_v14 = vrot.slane %v3492_v2, 7 }
 0x307   :  { %2540 = vmatmul.mubr.f32.vlgmr.msra.gmra.mxu1 %v3487_v59  ;;  %v3525_v18 = vmax.f32 %v935_v42, 0.0  ;;  %v3527_v20 = vmax.f32 %v936_v7, 0.0  ;;  %v983_v61 = vrot.slane %v3501_v52, 7  ;;  %v984_v23 = vrot.slane %v3510_v11, 7 }
 0x308   :  { %2542 = vmatprep.mubr.f32.mxu1 %v3489_v5  ;;  %2595 = vmatprep.mubr.msk.f32.mxu0 %vm2949_vm1, %v977_v33  ;;  %v979_v45 = vsel %vm77_vm0, %v977_v33, %v978_v36  ;;  %v937_v26 = vadd.f32 %v3462_v48, %v915_v12  ;;  %v917_v28 = vmul.f32 %v3457_v47, %v3327_v1  ;;  %v1994_v1 = vld [vmem:[%s3924_s2 + $0x150] sm:$0xff]  ;;  %v1026_v12 = vrot.slane %v3487_v59, 1 }
 0x309   :  { %2620 = vmatpush3.msra.mxu1 %v1999_v29  ;;  %2596 = vmatmul.mubr.f32.vlgmr.msra.gmra.mxu0 %v979_v45  ;;  %v982_v21 = vsel %vm77_vm0, %v980_v9, %v981_v14  ;;  %v938_v30 = vadd.f32 %v3462_v48, %v916_v17  ;;  %v918_v15 = vmul.f32 %v3457_v47, %v3332_v6  ;;  %v986_v32 = vrot.slane %v3525_v18, 7  ;;  %v1986_v45 = vld [vmem:[%s3924_s2 + $0x110] sm:$0xff]  ;;  %v1985_v17 = vld [vmem:[%s3924_s2 + $0x108] sm:$0xff] }
 0x30a   :  { %2621 = vmatprep.subr.mxu1 %v1998_v8  ;;  %2598 = vmatprep.mubr.msk.f32.mxu0 %vm2949_vm1, %v980_v9  ;;  %v987_v16 = vrot.slane %v3527_v20, 7  ;;  %v985_v35 = vsel %vm77_vm0, %v983_v61, %v984_v23  ;;  %v3553_v6 = vmax.f32 %v937_v26, 0.0  ;;  %v939_v29 = vadd.f32 %v3462_v48, %v917_v28 }
 0x30b   :  { %2622 = vmatpush3.msra.mxu1 %v1998_v8  ;;  %2676 = vmatpush3.msra.mxu0 %v3151_v51  ;;  %v1995_v51 = vld [vmem:[%s3924_s2 + $0x158] sm:$0xff]  ;;  %v3560_v34 = vmax.f32 %v938_v30, 0.0  ;;  %v940_v41 = vadd.f32 %v3462_v48, %v918_v15  ;;  %v919_v43 = vmul.f32 %v3457_v47, %v3336_v10  ;;  %v920_v44 = vmul.f32 %v3457_v47, %v3340_v31  ;;  %v2753_v30 = vld [vmem:[%s3923_s3 + $0x60] sm:$0xff] }
 0x30c   :  { %2543 = vmatmul.mubr.f32.gmra.mxu1 %v3492_v2  ;;  %2623 = vmatprep.subr.mxu1 %v1997_v13  ;;  %v988_v39 = vsel %vm77_vm0, %v986_v32, %v987_v16  ;;  %v989_v10 = vrot.slane %v3553_v6, 7  ;;  %v3575_v22 = vmax.f32 %v939_v29, 0.0  ;;  %v921_v31 = vmul.f32 %v3457_v47, %v3344_v19  ;;  %v1990_v19 = vld [vmem:[%s3924_s2 + $0x130] sm:$0xff]  ;;  %v1987_v8 = vld [vmem:[%s3924_s2 + $0x118] sm:$0xff] }
 0x30d   :  { %2545 = vmatprep.mubr.f32.mxu1 %v3501_v52  ;;  %2624 = vmatpush3.msra.mxu1 %v1997_v13  ;;  %v922_v49 = vmul.f32 %v3457_v47, %v3348_v37  ;;  %v990_v27 = vrot.slane %v3560_v34, 7  ;;  %v3586_v53 = vmax.f32 %v940_v41, 0.0  ;;  %v941_v25 = vadd.f32 %v3462_v48, %v919_v43  ;;  %v2754_v15 = vld [vmem:[%s3923_s3 + $0x58] sm:$0xff]  ;;  %v2756_v16 = vld [vmem:[%s3923_s3 + $0x50] sm:$0xff] }
 0x30e   :  { %2599 = vmatmul.mubr.f32.gmra.mxu0 %v982_v21  ;;  %2625 = vmatprep.subr.mxu1 %v1996_v56  ;;  %v942_v55 = vadd.f32 %v3462_v48, %v920_v44  ;;  %v992_v37 = vrot.slane %v3575_v22, 7  ;;  %v943_v47 = vadd.f32 %v3462_v48, %v921_v31  ;;  %v1025_v9 = vrot.slane %v3485_v4, 1  ;;  %v1984_v4 = vld [vmem:[%s3924_s2 + $0x100] sm:$0xff]  ;;  %v2759_v41 = vld [vmem:[%s3923_s3 + $0x38] sm:$0xff] }
 0x30f   :  { %2601 = vmatprep.mubr.msk.f32.mxu0 %vm2949_vm1, %v983_v61  ;;  %2626 = vmatpush3.msra.mxu1 %v1996_v56  ;;  %v944_v57 = vadd.f32 %v3462_v48, %v922_v49  ;;  %v991_v60 = vsel %vm77_vm0, %v989_v10, %v990_v27  ;;  %v3604_v58 = vmax.f32 %v941_v25, 0.0  ;;  %v993_v63 = vrot.slane %v3586_v53, 7  ;;  %v1988_v48 = vld [vmem:[%s3924_s2 + $0x120] sm:$0xff]  ;;  %v2763_v27 = vld [vmem:[%s3923_s3 + $0x18] sm:$0xff]  ;;  %v2764_v25 = vld [vmem:[%s3923_s3 + $0x10] sm:$0xff] }
 0x310   :  { %2546 = vmatmul.mubr.f32.gmra.mxu1 %v3510_v11  ;;  %2627 = vmatprep.subr.mxu1 %v1995_v51  ;;  %v3607_v3 = vmax.f32 %v942_v55, 0.0  ;;  %v3615_v0 = vmax.f32 %v943_v47, 0.0  ;;  %v1027_v59 = vsel %vm126_vm2, %v1025_v9, %v1026_v12  ;;  %v1028_v61 = vrot.slane %v3489_v5, 1  ;;  %v2751_v5 = vld [vmem:[%s3923_s3 + $0x70] sm:$0xff]  ;;  %v2765_v55 = vld [vmem:[%s3923_s3 + $0x8] sm:$0xff] }
 0x311   :  { %2548 = vmatprep.mubr.f32.mxu1 %v3525_v18  ;;  %2628 = vmatpush3.msra.mxu1 %v1995_v51  ;;  %v994_v33 = vsel %vm77_vm0, %v992_v37, %v993_v63  ;;  %v995_v36 = vrot.slane %v3604_v58, 7  ;;  %v3624_v7 = vmax.f32 %v944_v57, 0.0  ;;  %v1029_v23 = vrot.slane %v3492_v2, 1  ;;  %v2752_v2 = vld [vmem:[%s3923_s3 + $0x68] sm:$0xff] }
 0x312   :  { %2602 = vmatmul.mubr.f32.gmra.mxu0 %v985_v35  ;;  %2629 = vmatprep.subr.mxu1 %v1994_v1  ;;  %v996_v42 = vrot.slane %v3607_v3, 7  ;;  %v998_v14 = vrot.slane %v3615_v0, 7  ;;  %v1031_v28 = vrot.slane %v3501_v52, 1  ;;  %v1032_v21 = vrot.slane %v3510_v11, 1  ;;  %v2757_v35 = vld [vmem:[%s3923_s3 + $0x48] sm:$0xff] }
 0x313   :  { %2604 = vmatprep.mubr.msk.f32.mxu0 %vm2949_vm1, %v986_v32  ;;  %2630 = vmatpush3.msra.mxu1 %v1994_v1  ;;  %v999_v56 = vrot.slane %v3624_v7, 7  ;;  %v1030_v38 = vsel %vm126_vm2, %v1028_v61, %v1029_v23  ;;  %v1034_v11 = vrot.slane %v3525_v18, 1  ;;  %v1035_v51 = vrot.slane %v3527_v20, 1  ;;  %v2755_v1 = vld [vmem:[%s3923_s3 + $0x78] sm:$0xff] }
 0x314   :  { %2549 = vmatmul.mubr.f32.gmra.mxu1 %v3527_v20  ;;  %2631 = vmatprep.subr.mxu1 %v1993_v40  ;;  %v997_v13 = vsel %vm77_vm0, %v995_v36, %v996_v42  ;;  %v1033_v52 = vsel %vm126_vm2, %v1031_v28, %v1032_v21  ;;  %v1037_v20 = vrot.slane %v3553_v6, 1  ;;  %v1038_v32 = vrot.slane %v3560_v34, 1 }
 0x315   :  { %2551 = vmatprep.mubr.f32.mxu1 %v3553_v6  ;;  %2632 = vmatpush3.msra.mxu1 %v1993_v40  ;;  %v1000_v26 = vsel %vm77_vm0, %v998_v14, %v999_v56  ;;  %v1036_v18 = vsel %vm126_vm2, %v1034_v11, %v1035_v51  ;;  %v1040_v29 = vrot.slane %v3575_v22, 1  ;;  %v1041_v40 = vrot.slane %v3586_v53, 1 }
 0x316   :  { %2605 = vmatmul.mubr.f32.gmra.mxu0 %v988_v39  ;;  %2633 = vmatprep.subr.mxu1 %v1992_v46  ;;  %v1039_v6 = vsel %vm126_vm2, %v1037_v20, %v1038_v32  ;;  %v1043_v44 = vrot.slane %v3604_v58, 1  ;;  %v1044_v39 = vrot.slane %v3607_v3, 1  ;;  %v1046_v31 = vrot.slane %v3615_v0, 1 }
 0x317   :  { %2607 = vmatprep.mubr.msk.f32.mxu0 %vm2949_vm1, %v989_v10  ;;  %2634 = vmatpush3.msra.mxu1 %v1992_v46  ;;  %v1042_v43 = vsel %vm126_vm2, %v1040_v29, %v1041_v40  ;;  %v2760_v46 = vld [vmem:[%s3923_s3 + $0x30] sm:$0xff]  ;;  %v2761_v10 = vld [vmem:[%s3923_s3 + $0x28] sm:$0xff]  ;;  %v1047_v49 = vrot.slane %v3624_v7, 1 }
 0x318   :  { %2552 = vmatmul.mubr.f32.gmra.mxu1 %v3560_v34  ;;  %2635 = vmatprep.subr.mxu1 %v1991_v24  ;;  %v2758_v34 = vld [vmem:[%s3923_s3 + $0x40] sm:$0xff] }
 0x319   :  { %2554 = vmatprep.mubr.f32.mxu1 %v3575_v22  ;;  %2636 = vmatpush3.msra.mxu1 %v1991_v24  ;;  %v1045_v22 = vsel %vm126_vm2, %v1043_v44, %v1044_v39  ;;  %v2762_v24 = vld [vmem:[%s3923_s3 + $0x20] sm:$0xff] }
 0x31a   :  { %2608 = vmatmul.mubr.f32.gmra.mxu0 %v991_v60  ;;  %2637 = vmatprep.subr.mxu1 %v1990_v19 }
 0x31b   :  { %2610 = vmatprep.mubr.msk.f32.mxu0 %vm2949_vm1, %v992_v37  ;;  %2638 = vmatpush3.msra.mxu1 %v1990_v19  ;;  %v2766_v19 = vld [vmem:[%s3923_s3] sm:$0xff] }
 0x31c   :  { %2555 = vmatmul.mubr.f32.gmra.mxu1 %v3586_v53  ;;  %2639 = vmatprep.subr.mxu1 %v1989_v62  ;;  %v1048_v53 = vsel %vm126_vm2, %v1046_v31, %v1047_v49 }
 0x31d   :  { %2557 = vmatprep.mubr.f32.mxu1 %v3604_v58  ;;  %2640 = vmatpush3.msra.mxu1 %v1989_v62 }
 0x31e   :  { %2611 = vmatmul.mubr.f32.gmra.mxu0 %v994_v33  ;;  %2641 = vmatprep.subr.mxu1 %v1988_v48 }
 0x31f   :  { %2613 = vmatprep.mubr.msk.f32.mxu0 %vm2949_vm1, %v995_v36  ;;  %2642 = vmatpush3.msra.mxu1 %v1988_v48 }
 0x320   :  { %2558 = vmatmul.mubr.f32.gmra.mxu1 %v3607_v3  ;;  %2643 = vmatprep.subr.mxu1 %v1987_v8 }
 0x321   :  { %2560 = vmatprep.mubr.f32.mxu1 %v3615_v0  ;;  %2644 = vmatpush3.msra.mxu1 %v1987_v8 }
 0x322   :  { %2614 = vmatmul.mubr.f32.gmra.mxu0 %v997_v13  ;;  %2645 = vmatprep.subr.mxu1 %v1986_v45 }
 0x323   :  { %2616 = vmatprep.mubr.msk.f32.mxu0 %vm2949_vm1, %v998_v14  ;;  %2646 = vmatpush3.msra.mxu1 %v1986_v45 }
 0x324   :  { %2561 = vmatmul.mubr.f32.gmra.mxu1 %v3624_v7  ;;  %2647 = vmatprep.subr.mxu1 %v1985_v17 }
 0x325   :  { %2648 = vmatpush3.msra.mxu1 %v1985_v17  ;;  %2651 = vmatprep.mubr.f32.mxu1 %v1027_v59 }
 0x326   :  { %2617 = vmatmul.mubr.f32.gmra.mxu0 %v1000_v26  ;;  %2649 = vmatprep.subr.mxu1 %v1984_v4 }
 0x327   :  { %2650 = vmatpush3.msra.mxu1 %v1984_v4  ;;  %2677 = vmatprep.subr.mxu0 %v2783_v50 }
 0x328   :  { %2652 = vmatmul.mubr.msk.f32.vlgmr.msra.gmra.mxu1 %vm126_vm2, %v1026_v12  ;;  %2678 = vmatpush3.msra.mxu0 %v2751_v5 }
 0x329   :  { %2654 = vmatprep.mubr.f32.mxu1 %v1030_v38  ;;  %2679 = vmatprep.subr.mxu0 %v2783_v50 }
 0x32a   :  { %2680 = vmatpush3.msra.mxu0 %v2752_v2  ;;  %2707 = vmatprep.mubr.msk.f32.mxu0 %vm2784_vm3, %v2783_v50 }
 0x32b   :  { %2681 = vmatprep.subr.mxu0 %v2783_v50  ;;  %2710 = vmatprep.subr.mxu1 %v2783_v50 }
 0x32c   :  { %2655 = vmatmul.mubr.msk.f32.gmra.mxu1 %vm126_vm2, %v1029_v23  ;;  %2682 = vmatpush3.msra.mxu0 %v2753_v30 }
 0x32d   :  { %2657 = vmatprep.mubr.f32.mxu1 %v1033_v52  ;;  %2683 = vmatprep.subr.mxu0 %v2783_v50 }
 0x32e   :  { %2684 = vmatpush3.msra.mxu0 %v2754_v15  ;;  %2711 = vmatpush3.msra.mxu1 %v2755_v1 }
 0x32f   :  { %2685 = vmatprep.subr.mxu0 %v2783_v50  ;;  %2712 = vmatprep.subr.mxu1 %v2783_v50 }
 0x330   :  { %2658 = vmatmul.mubr.msk.f32.gmra.mxu1 %vm126_vm2, %v1032_v21  ;;  %2686 = vmatpush3.msra.mxu0 %v2756_v16 }
 0x331   :  { %2660 = vmatprep.mubr.f32.mxu1 %v1036_v18  ;;  %2687 = vmatprep.subr.mxu0 %v2783_v50 }
 0x332   :  { %2688 = vmatpush3.msra.mxu0 %v2757_v35  ;;  %2713 = vmatpush3.msra.mxu1 %v2751_v5 }
 0x333   :  { %2689 = vmatprep.subr.mxu0 %v2783_v50  ;;  %2714 = vmatprep.subr.mxu1 %v2783_v50 }
 0x334   :  { %2661 = vmatmul.mubr.msk.f32.gmra.mxu1 %vm126_vm2, %v1035_v51  ;;  %2690 = vmatpush3.msra.mxu0 %v2758_v34 }
 0x335   :  { %2663 = vmatprep.mubr.f32.mxu1 %v1039_v6  ;;  %2691 = vmatprep.subr.mxu0 %v2783_v50 }
 0x336   :  { %2692 = vmatpush3.msra.mxu0 %v2759_v41  ;;  %2715 = vmatpush3.msra.mxu1 %v2752_v2 }
 0x337   :  { %2693 = vmatprep.subr.mxu0 %v2783_v50  ;;  %2716 = vmatprep.subr.mxu1 %v2783_v50 }
 0x338   :  { %2664 = vmatmul.mubr.msk.f32.gmra.mxu1 %vm126_vm2, %v1038_v32  ;;  %2694 = vmatpush3.msra.mxu0 %v2760_v46 }
 0x339   :  { %2666 = vmatprep.mubr.f32.mxu1 %v1042_v43  ;;  %2695 = vmatprep.subr.mxu0 %v2783_v50 }
 0x33a   :  { %2696 = vmatpush3.msra.mxu0 %v2761_v10  ;;  %2717 = vmatpush3.msra.mxu1 %v2753_v30 }
 0x33b   :  { %2697 = vmatprep.subr.mxu0 %v2783_v50  ;;  %2718 = vmatprep.subr.mxu1 %v2783_v50 }
 0x33c   :  { %2667 = vmatmul.mubr.msk.f32.gmra.mxu1 %vm126_vm2, %v1041_v40  ;;  %2698 = vmatpush3.msra.mxu0 %v2762_v24 }
 0x33d   :  { %2669 = vmatprep.mubr.f32.mxu1 %v1045_v22  ;;  %2699 = vmatprep.subr.mxu0 %v2783_v50 }
 0x33e   :  { %2700 = vmatpush3.msra.mxu0 %v2763_v27  ;;  %2719 = vmatpush3.msra.mxu1 %v2754_v15 }
 0x33f   :  { %2701 = vmatprep.subr.mxu0 %v2783_v50  ;;  %2720 = vmatprep.subr.mxu1 %v2783_v50 }
 0x340   :  { %2670 = vmatmul.mubr.msk.f32.gmra.mxu1 %vm126_vm2, %v1044_v39  ;;  %2702 = vmatpush3.msra.mxu0 %v2764_v25 }
 0x341   :  { %2672 = vmatprep.mubr.f32.mxu1 %v1048_v53  ;;  %2703 = vmatprep.subr.mxu0 %v2783_v50 }
 0x342   :  { %2704 = vmatpush3.msra.mxu0 %v2765_v55  ;;  %2721 = vmatpush3.msra.mxu1 %v2756_v16 }
 0x343   :  { %2705 = vmatprep.subr.mxu0 %v2783_v50  ;;  %2722 = vmatprep.subr.mxu1 %v2783_v50 }
 0x344   :  { %2673 = vmatmul.mubr.msk.f32.gmra.mxu1 %vm126_vm2, %v1047_v49  ;;  %2706 = vmatpush3.msra.mxu0 %v2766_v19 }
 0x345   :  { %2723 = vmatpush3.msra.mxu1 %v2757_v35  ;;  %2742 = vmatprep.mubr.msk.f32.mxu1 %vm2784_vm3, %v2783_v50 }
 0x346   :  { %2724 = vmatprep.subr.mxu1 %v2783_v50 }
 0x347   :  { %2725 = vmatpush3.msra.mxu1 %v2758_v34 }
 0x348   :  { %2726 = vmatprep.subr.mxu1 %v2783_v50 }
 0x349   :  { %2727 = vmatpush3.msra.mxu1 %v2759_v41 }
 0x34a   :  { %2728 = vmatprep.subr.mxu1 %v2783_v50 }
 0x34b   :  { %2729 = vmatpush3.msra.mxu1 %v2760_v46 }
 0x34c   :  { %2730 = vmatprep.subr.mxu1 %v2783_v50 }
 0x34d   :  { %2731 = vmatpush3.msra.mxu1 %v2761_v10 }
 0x34e   :  { %2732 = vmatprep.subr.mxu1 %v2783_v50 }
 0x34f   :  { %2733 = vmatpush3.msra.mxu1 %v2762_v24 }
 0x350   :  { %2734 = vmatprep.subr.mxu1 %v2783_v50 }
 0x351   :  { %2735 = vmatpush3.msra.mxu1 %v2763_v27 }
 0x352   :  { %2736 = vmatprep.subr.mxu1 %v2783_v50 }
 0x353   :  { %2737 = vmatpush3.msra.mxu1 %v2764_v25 }
 0x354   :  { %2738 = vmatprep.subr.mxu1 %v2783_v50 }
 0x355   :  { %2739 = vmatpush3.msra.mxu1 %v2765_v55 }
 0x356   :  { %2740 = vmatprep.subr.mxu1 %v2783_v50 }
 0x357   :  { %2741 = vmatpush3.msra.mxu1 %v2766_v19 }
 0x3c7   :  { %v2541_v37 = vpop.f32.mrf.mxu1 }
 0x3c9   :  { %v1172_v47 = vpop.f32.mrf.mxu1  ;;  %v2597_v57 = vpop.f32.mrf.mxu0 }
 0x3ca   :  { %v1323_v28 = vadd.f32 %v2597_v57, %v2541_v37 }
 0x3cb   :  { %v1317_v60 = vpop.f32.mrf.mxu0 }
 0x3cc   :  { %v2544_v62 = vpop.f32.mrf.mxu1  ;;  %v1318_v23 = vadd.f32 %v1317_v60, %v1172_v47 }
 0x3ce   :  { %v1182_v58 = vpop.f32.mrf.mxu1  ;;  %v2600_v63 = vpop.f32.mrf.mxu0 }
 0x3cf   :  { %v1333_v30 = vadd.f32 %v2600_v63, %v2544_v62 }
 0x3d0   :  { %v2547_v3 = vpop.f32.mrf.mxu1  ;;  %v1327_v48 = vpop.f32.mrf.mxu0 }
 0x3d1   :  { %v1328_v2 = vadd.f32 %v1327_v48, %v1182_v58 }
 0x3d2   :  { %v1192_v0 = vpop.f32.mrf.mxu1  ;;  %v2603_v36 = vpop.f32.mrf.mxu0 }
 0x3d3   :  { %v1343_v29 = vadd.f32 %v2603_v36, %v2547_v3 }
 0x3d4   :  { %v2550_v33 = vpop.f32.mrf.mxu1  ;;  %v1337_v7 = vpop.f32.mrf.mxu0 }
 0x3d5   :  { %v1338_v20 = vadd.f32 %v1337_v7, %v1192_v0 }
 0x3d6   :  { %v1202_v8 = vpop.f32.mrf.mxu1  ;;  %v2606_v12 = vpop.f32.mrf.mxu0 }
 0x3d7   :  { %v1353_v22 = vadd.f32 %v2606_v12, %v2550_v33 }
 0x3d8   :  { %v2553_v42 = vpop.f32.mrf.mxu1  ;;  %v1347_v14 = vpop.f32.mrf.mxu0 }
 0x3d9   :  { %v1348_v43 = vadd.f32 %v1347_v14, %v1202_v8 }
 0x3da   :  { %v1212_v45 = vpop.f32.mrf.mxu1  ;;  %v2609_v4 = vpop.f32.mrf.mxu0 }
 0x3db   :  { %v1363_v37 = vadd.f32 %v2609_v4, %v2553_v42 }
 0x3dc   :  { %v2556_v9 = vpop.f32.mrf.mxu1  ;;  %v1357_v26 = vpop.f32.mrf.mxu0 }
 0x3dd   :  { %v1358_v27 = vadd.f32 %v1357_v26, %v1212_v45 }
 0x3de   :  { %v1222_v50 = vpop.f32.mrf.mxu1  ;;  %v2612_v11 = vpop.f32.mrf.mxu0 }
 0x3df   :  { %v1373_v0 = vadd.f32 %v2612_v11, %v2556_v9 }
 0x3e0   :  { %v2559_v13 = vpop.f32.mrf.mxu1  ;;  %v1367_v35 = vpop.f32.mrf.mxu0 }
 0x3e1   :  { %v1368_v62 = vadd.f32 %v1367_v35, %v1222_v50 }
 0x3e2   :  { %v1232_v17 = vpop.f32.mrf.mxu1  ;;  %v2615_v46 = vpop.f32.mrf.mxu0 }
 0x3e4   :  { %v3761_v56 = vpop.f32.mrf.mxu1  ;;  %v1377_v55 = vpop.f32.mrf.mxu0 }
 0x3e5   :  { %v1378_v7 = vadd.f32 %v1377_v55, %v1232_v17 }
 0x3e6   :  { %v1242_v59 = vpop.f32.mrf.mxu1  ;;  %v2618_v3 = vpop.f32.mrf.mxu0 }
 0x3e8   :  { %v2653_v61 = vpop.f32.mrf.mxu1  ;;  %v1387_v14 = vpop.f32.mrf.mxu0 }
 0x3e9   :  { %v3765_v52 = vadd.f32 %v2653_v61, %v1323_v28 }
 0x3ea   :  { %v1479_v38 = vpop.f32.mrf.mxu1 }
 0x3eb   :  { %v3763_v21 = vadd.f32 %v1479_v38, %v1318_v23  ;;  %v1383_v23 = vadd.f32 %v2615_v46, %v2559_v13  ;;  %v1388_v38 = vadd.f32 %v1387_v14, %v1242_v59 }
 0x3ec   :  { %v2656_v5 = vpop.f32.mrf.mxu1 }
 0x3ed   :  { %v1576_v15 = vadd.f32 %v3765_v52, %v3763_v21  ;;  %v3771_v32 = vadd.f32 %v2656_v5, %v1333_v30 }
 0x3ee   :  { %v1489_v51 = vpop.f32.mrf.mxu1 }
 0x3ef   :  { %v3769_v1 = vadd.f32 %v1489_v51, %v1328_v2  ;;  %v1393_v2 = vadd.f32 %v2618_v3, %v3761_v56 }
 0x3f0   :  { %v2659_v18 = vpop.f32.mrf.mxu1 }
 0x3f1   :  { %v1577_v16 = vadd.f32 %v1576_v15, %v3769_v1  ;;  %v3777_v44 = vadd.f32 %v2659_v18, %v1343_v29 }
 0x3f2   :  { %v1499_v6 = vpop.f32.mrf.mxu1 }
 0x3f3   :  { %v3774_v40 = vadd.f32 %v1499_v6, %v1338_v20  ;;  %v1578_v34 = vadd.f32 %v1577_v16, %v3771_v32 }
 0x3f4   :  { %v2662_v41 = vpop.f32.mrf.mxu1 }
 0x3f5   :  { %v1579_v39 = vadd.f32 %v1578_v34, %v3774_v40  ;;  %v1565_v53 = vadd.f32 %v2662_v41, %v1353_v22 }
 0x3f6   :  { %v1509_v10 = vpop.f32.mrf.mxu1 }
 0x3f7   :  { %v3780_v31 = vadd.f32 %v1509_v10, %v1348_v43  ;;  %v1580_v49 = vadd.f32 %v1579_v39, %v3777_v44 }
 0x3f8   :  { %v2665_v24 = vpop.f32.mrf.mxu1 }
 0x3f9   :  { %v1581_v25 = vadd.f32 %v1580_v49, %v3780_v31  ;;  %v1567_v58 = vadd.f32 %v2665_v24, %v1363_v37 }
 0x3fa   :  { %v1519_v19 = vpop.f32.mrf.mxu1 }
 0x3fb   :  { %v1566_v47 = vadd.f32 %v1519_v19, %v1358_v27  ;;  %v1582_v57 = vadd.f32 %v1581_v25, %v1565_v53 }
 0x3fc   :  { %v2668_v60 = vpop.f32.mrf.mxu1 }
 0x3fd   :  { %v1583_v63 = vadd.f32 %v1582_v57, %v1566_v47  ;;  %v1569_v45 = vadd.f32 %v2668_v60, %v1373_v0 }
 0x3fe   :  { %v1529_v48 = vpop.f32.mrf.mxu1 }
 0x3ff   :  { %v1568_v33 = vadd.f32 %v1529_v48, %v1368_v62  ;;  %v1584_v36 = vadd.f32 %v1583_v63, %v1567_v58 }
 0x400   :  { %v2671_v8 = vpop.f32.mrf.mxu1 }
 0x401   :  { %v1585_v12 = vadd.f32 %v1584_v36, %v1568_v33  ;;  %v1571_v28 = vadd.f32 %v2671_v8, %v1383_v23 }
 0x402   :  { %v1539_v61 = vpop.f32.mrf.mxu1 }
 0x403   :  { %v1570_v26 = vadd.f32 %v1539_v61, %v1378_v7  ;;  %v1586_v42 = vadd.f32 %v1585_v12, %v1569_v45 }
 0x404   :  { %v2674_v4 = vpop.f32.mrf.mxu1 }
 0x405   :  { %v1587_v50 = vadd.f32 %v1586_v42, %v1570_v26  ;;  %v1573_v11 = vadd.f32 %v2674_v4, %v1393_v2 }
 0x406   :  { %v1549_v5 = vpop.f32.mrf.mxu1 }
 0x407   :  { %v1572_v51 = vadd.f32 %v1549_v5, %v1388_v38  ;;  %v1588_v9 = vadd.f32 %v1587_v50, %v1571_v28 }
 0x409   :  { %v1589_v30 = vadd.f32 %v1588_v9, %v1572_v51 }
 0x40b   :  { %v1590_v15 = vadd.f32 %v1589_v30, %v1573_v11 }
 0x40d   :  { %v1591_v17 = vrot.slane %v1590_v15, 4 }
 0x40f   :  { %v1592_v18 = vadd.f32 %v1591_v17, %v1590_v15 }
 0x411   :  { %v1593_v20 = vrot.slane %v1592_v18, 2 }
 0x413   :  { %v1594_v16 = vadd.f32 %v1593_v20, %v1592_v18 }
 0x415   :  { %v1595_v35 = vrot.slane %v1594_v16, 1 }
 0x417   :  { %v1596_v13 = vadd.f32 %v1595_v35, %v1594_v16 }
 0x419   :  { %2708 = vmatmul.mubr.f32.vlgmr.msra.gmra.mxu0 %v1596_v13 }
 0x4d9   :  { %v1663_v6 = vpop.f32.mrf.mxu0 }
 0x4da   :  { %v1667_v29 = vmul.f32 0.00048828125, %v1663_v6 }
 0x4db   :  { %v2709_v59 = vpop.f32.mrf.mxu0 }
 0x4dc   :  { %v1671_v34 = vrot.slane %v1667_v29, %v3277_v54 }
 0x4de   :  { %v3787_v41 = vsub.f32 %v3763_v21, %v1671_v34  ;;  %v3790_v56 = vsub.f32 %v3765_v52, %v1671_v34  ;;  %v3793_v43 = vsub.f32 %v3769_v1, %v1671_v34  ;;  %v3800_v10 = vsub.f32 %v3771_v32, %v1671_v34 }
 0x4df   :  { %v3803_v22 = vsub.f32 %v3774_v40, %v1671_v34  ;;  %v1677_v49 = vsub.f32 %v3777_v44, %v1671_v34  ;;  %v1678_v27 = vsub.f32 %v3780_v31, %v1671_v34  ;;  %v1679_v55 = vsub.f32 %v1565_v53, %v1671_v34 }
 0x4e0   :  { %v1688_v39 = vmul.f32 %v3787_v41, %v3787_v41  ;;  %v1689_v46 = vmul.f32 %v3790_v56, %v3790_v56  ;;  %v1690_v21 = vmul.f32 %v3793_v43, %v3793_v43  ;;  %v1691_v1 = vmul.f32 %v3800_v10, %v3800_v10 }
 0x4e1   :  { %v1692_v25 = vmul.f32 %v3803_v22, %v3803_v22  ;;  %v1693_v19 = vmul.f32 %v1677_v49, %v1677_v49  ;;  %v1680_v37 = vsub.f32 %v1566_v47, %v1671_v34  ;;  %v1694_v57 = vmul.f32 %v1678_v27, %v1678_v27 }
 0x4e2   :  { %v1704_v52 = vadd.f32 %v1689_v46, %v1688_v39  ;;  %v1681_v62 = vsub.f32 %v1567_v58, %v1671_v34  ;;  %v1695_v63 = vmul.f32 %v1679_v55, %v1679_v55  ;;  %v1682_v44 = vsub.f32 %v1568_v33, %v1671_v34 }
 0x4e3   :  { %v1696_v48 = vmul.f32 %v1680_v37, %v1680_v37  ;;  %v1683_v36 = vsub.f32 %v1569_v45, %v1671_v34  ;;  %v1684_v31 = vsub.f32 %v1570_v26, %v1671_v34  ;;  %v1685_v61 = vsub.f32 %v1571_v28, %v1671_v34 }
 0x4e4   :  { %v1705_v24 = vadd.f32 %v1704_v52, %v1690_v21  ;;  %v1697_v8 = vmul.f32 %v1681_v62, %v1681_v62  ;;  %v1698_v12 = vmul.f32 %v1682_v44, %v1682_v44  ;;  %v1686_v42 = vsub.f32 %v1572_v51, %v1671_v34  ;;  %v2008_v21 = vld [vmem:[%s3928_s7] ss:$0 sm:$0xff] }
 0x4e5   :  { %v1699_v23 = vmul.f32 %v1683_v36, %v1683_v36  ;;  %v1700_v4 = vmul.f32 %v1684_v31, %v1684_v31  ;;  %v1687_v38 = vsub.f32 %v1573_v11, %v1671_v34  ;;  %v1701_v50 = vmul.f32 %v1685_v61, %v1685_v61  ;;  %v1574_v11 = vld [vmem:[%s3927_s6] sm:$0x1] }
 0x4e6   :  { %v1706_v32 = vadd.f32 %v1705_v24, %v1691_v1  ;;  %v1702_v5 = vmul.f32 %v1686_v42, %v1686_v42 }
 0x4e7   :  { %v1703_v33 = vmul.f32 %v1687_v38, %v1687_v38 }
 0x4e8   :  { %v1707_v40 = vadd.f32 %v1706_v32, %v1692_v25 }
 0x4ea   :  { %v1708_v60 = vadd.f32 %v1707_v40, %v1693_v19 }
 0x4ec   :  { %v1709_v3 = vadd.f32 %v1708_v60, %v1694_v57 }
 0x4ee   :  { %v1710_v0 = vadd.f32 %v1709_v3, %v1695_v63 }
 0x4f0   :  { %v1711_v7 = vadd.f32 %v1710_v0, %v1696_v48 }
 0x4f2   :  { %v1712_v14 = vadd.f32 %v1711_v7, %v1697_v8 }
 0x4f4   :  { %v1713_v53 = vadd.f32 %v1712_v14, %v1698_v12  ;;  %v2768_v14 = vld [vmem:[%s3922_s0 + $0x8] sm:$0xff] }
 0x4f6   :  { %v1714_v47 = vadd.f32 %v1713_v53, %v1699_v23  ;;  %v2769_v23 = vld [vmem:[%s3922_s0 + $0x10] sm:$0xff] }
 0x4f8   :  { %v1715_v58 = vadd.f32 %v1714_v47, %v1700_v4  ;;  %v2771_v47 = vld [vmem:[%s3922_s0 + $0x20] sm:$0xff] }
 0x4fa   :  { %v1716_v2 = vadd.f32 %v1715_v58, %v1701_v50  ;;  %v2772_v50 = vld [vmem:[%s3922_s0 + $0x28] sm:$0xff] }
 0x4fc   :  { %v1717_v9 = vadd.f32 %v1716_v2, %v1702_v5  ;;  %v2773_v5 = vld [vmem:[%s3922_s0 + $0x30] sm:$0xff] }
 0x4fe   :  { %v1718_v30 = vadd.f32 %v1717_v9, %v1703_v33  ;;  %v2774_v33 = vld [vmem:[%s3922_s0 + $0x38] sm:$0xff] }
 0x500   :  { %v1719_v45 = vrot.slane %v1718_v30, 4 }
 0x502   :  { %v1720_v15 = vadd.f32 %v1719_v45, %v1718_v30  ;;  %v2775_v30 = vld [vmem:[%s3922_s0 + $0x40] sm:$0xff] }
 0x504   :  { %v1721_v17 = vrot.slane %v1720_v15, 2 }
 0x506   :  { %v1722_v26 = vadd.f32 %v1721_v17, %v1720_v15  ;;  %v2776_v15 = vld [vmem:[%s3922_s0 + $0x48] sm:$0xff] }
 0x508   :  { %v1723_v18 = vrot.slane %v1722_v26, 1 }
 0x50a   :  { %v1724_v20 = vadd.f32 %v1723_v18, %v1722_v26  ;;  %v2777_v26 = vld [vmem:[%s3922_s0 + $0x50] sm:$0xff] }
 0x50c   :  { %2743 = vmatmul.mubr.f32.vlgmr.msra.gmra.mxu1 %v1724_v20  ;;  %v2778_v20 = vld [vmem:[%s3922_s0 + $0x58] sm:$0xff] }
 0x5cc   :  { %v1791_v28 = vpop.f32.mrf.mxu1 }
 0x5cd   :  { %v1795_v16 = vmul.f32 0.00048828125, %v1791_v28 }
 0x5ce   :  { %v2744_v51 = vpop.f32.mrf.mxu1 }
 0x5cf   :  { %v1796_v35 = vadd.f32 1e-05, %v1795_v16  ;;  %v2779_v16 = vld [vmem:[%s3922_s0 + $0x60] sm:$0xff] }
 0x5d1   :  { %2749 = vrsqrt.f32 %v1796_v35  ;;  %v2780_v35 = vld [vmem:[%s3922_s0 + $0x68] sm:$0xff] }
 0x5de   :  { %v2750_v13 = vpop.eup %2749 }
 0x5df   :  { %v1798_v6 = vmul.f32 %v2750_v13, %v1574_v11  ;;  %v2781_v13 = vld [vmem:[%s3922_s0 + $0x70] sm:$0xff] }
 0x5e1   :  { %v1803_v29 = vrot.slane %v1798_v6, %v3277_v54 }
 0x5e3   :  { %v1805_v59 = vmul.f32 %v1803_v29, %v3787_v41  ;;  %v1806_v34 = vmul.f32 %v1803_v29, %v3790_v56  ;;  %v1807_v39 = vmul.f32 %v1803_v29, %v3793_v43  ;;  %v1808_v46 = vmul.f32 %v1803_v29, %v3800_v10 }
 0x5e4   :  { %v1809_v52 = vmul.f32 %v1803_v29, %v3803_v22  ;;  %v1810_v1 = vmul.f32 %v1803_v29, %v1677_v49  ;;  %v1811_v24 = vmul.f32 %v1803_v29, %v1678_v27  ;;  %v1812_v25 = vmul.f32 %v1803_v29, %v1679_v55 }
 0x5e5   :  { %v1813_v32 = vmul.f32 %v1803_v29, %v1680_v37  ;;  %v1814_v19 = vmul.f32 %v1803_v29, %v1681_v62  ;;  %v1815_v54 = vmul.f32 %v1803_v29, %v1682_v44  ;;  %v1816_v40 = vmul.f32 %v1803_v29, %v1683_v36 }
 0x5e6   :  { %v1817_v41 = vmul.f32 %v1803_v29, %v1684_v31  ;;  %v1818_v57 = vmul.f32 %v1803_v29, %v1685_v61  ;;  %v1819_v56 = vmul.f32 %v1803_v29, %v1686_v42  ;;  %v1820_v60 = vmul.f32 %v1803_v29, %v1687_v38  ;;  %v2767_v31 = vld [vmem:[%s3922_s0] sm:$0xff]  ;;  %v2770_v42 = vld [vmem:[%s3922_s0 + $0x18] sm:$0xff] }
 0x5e7   :  { %v1827_v43 = vadd.f32 %v2008_v21, %v1805_v59  ;;  %v1828_v63 = vadd.f32 %v2008_v21, %v1806_v34  ;;  %v1829_v10 = vadd.f32 %v2008_v21, %v1807_v39  ;;  %v1830_v3 = vadd.f32 %v2008_v21, %v1808_v46  ;;  %v2782_v29 = vld [vmem:[%s3922_s0 + $0x78] sm:$0xff] }
 0x5e8   :  { %v1831_v48 = vadd.f32 %v2008_v21, %v1809_v52  ;;  %v1832_v0 = vadd.f32 %v2008_v21, %v1810_v1  ;;  %v1833_v8 = vadd.f32 %v2008_v21, %v1811_v24  ;;  %v1834_v7 = vadd.f32 %v2008_v21, %v1812_v25 }
 0x5e9   :  { %v1835_v22 = vadd.f32 %v2008_v21, %v1813_v32  ;;  %v1836_v49 = vadd.f32 %v2008_v21, %v1814_v19  ;;  %v1837_v27 = vadd.f32 %v2008_v21, %v1815_v54  ;;  %v1838_v55 = vadd.f32 %v2008_v21, %v1816_v40 }
 0x5ea   :  { %v1839_v37 = vadd.f32 %v2008_v21, %v1817_v41  ;;  %v1840_v62 = vadd.f32 %v2008_v21, %v1818_v57  ;;  %v1841_v44 = vadd.f32 %v2008_v21, %v1819_v56  ;;  %v1842_v36 = vadd.f32 %v2008_v21, %v1820_v60 }
 0x5eb   :  { %v1843_v12 = vadd.f32 %v2767_v31, %v1827_v43  ;;  %v1844_v61 = vadd.f32 %v2768_v14, %v1828_v63  ;;  %v1845_v53 = vadd.f32 %v2769_v23, %v1829_v10  ;;  %v1846_v4 = vadd.f32 %v2770_v42, %v1830_v3 }
 0x5ec   :  { %v1847_v38 = vadd.f32 %v2771_v47, %v1831_v48  ;;  %v1848_v58 = vadd.f32 %v2772_v50, %v1832_v0  ;;  %v1849_v2 = vadd.f32 %v2773_v5, %v1833_v8  ;;  %v1850_v9 = vadd.f32 %v2774_v33, %v1834_v7 }
 0x5ed   :  { %v1851_v45 = vadd.f32 %v2775_v30, %v1835_v22  ;;  %v1852_v17 = vadd.f32 %v2776_v15, %v1836_v49  ;;  %v1853_v18 = vadd.f32 %v2777_v26, %v1837_v27  ;;  %v1854_v28 = vadd.f32 %v2778_v20, %v1838_v55 }
 0x5ee   :  { %v1855_v51 = vadd.f32 %v2779_v16, %v1839_v37  ;;  %v1856_v11 = vadd.f32 %v2780_v35, %v1840_v62  ;;  %v1857_v6 = vadd.f32 %v2781_v13, %v1841_v44  ;;  %v1858_v59 = vadd.f32 %v2782_v29, %v1842_v36 }
 0x5ef   :  { %v1859_v34 = vmax.f32 %v1843_v12, 0.0  ;;  %v1860_v39 = vmax.f32 %v1844_v61, 0.0  ;;  %v1861_v46 = vmax.f32 %v1845_v53, 0.0  ;;  %v1862_v21 = vmax.f32 %v1846_v4, 0.0 }
 0x5f0   :  { %v1863_v52 = vmax.f32 %v1847_v38, 0.0  ;;  %v1864_v1 = vmax.f32 %v1848_v58, 0.0  ;;  %v1865_v24 = vmax.f32 %v1849_v2, 0.0  ;;  %v1866_v25 = vmax.f32 %v1850_v9, 0.0 }
 0x5f1   :  { %v1867_v32 = vmax.f32 %v1851_v45, 0.0  ;;  %v1868_v19 = vmax.f32 %v1852_v17, 0.0  ;;  %v1869_v54 = vmax.f32 %v1853_v18, 0.0  ;;  %v1870_v40 = vmax.f32 %v1854_v28, 0.0  ;;  %1875 = vst [vmem:[%s3929_s8] sm:$0xff] %v1859_v34  ;;  %1876 = vst [vmem:[%s3929_s8 + $0x8] sm:$0xff] %v1860_v39 }
 0x5f2   :  { %1877 = vst [vmem:[%s3929_s8 + $0x10] sm:$0xff] %v1861_v46  ;;  %1878 = vst [vmem:[%s3929_s8 + $0x18] sm:$0xff] %v1862_v21  ;;  %v1871_v41 = vmax.f32 %v1855_v51, 0.0  ;;  %v1872_v57 = vmax.f32 %v1856_v11, 0.0  ;;  %v1873_v56 = vmax.f32 %v1857_v6, 0.0  ;;  %v1874_v60 = vmax.f32 %v1858_v59, 0.0 }
 0x5f3   :  { %1879 = vst [vmem:[%s3929_s8 + $0x20] sm:$0xff] %v1863_v52  ;;  %1880 = vst [vmem:[%s3929_s8 + $0x28] sm:$0xff] %v1864_v1 }
 0x5f4   :  { %1881 = vst [vmem:[%s3929_s8 + $0x30] sm:$0xff] %v1865_v24  ;;  %1882 = vst [vmem:[%s3929_s8 + $0x38] sm:$0xff] %v1866_v25 }
 0x5f5   :  { %1883 = vst [vmem:[%s3929_s8 + $0x40] sm:$0xff] %v1867_v32  ;;  %1884 = vst [vmem:[%s3929_s8 + $0x48] sm:$0xff] %v1868_v19 }
 0x5f6   :  { %1885 = vst [vmem:[%s3929_s8 + $0x50] sm:$0xff] %v1869_v54  ;;  %1886 = vst [vmem:[%s3929_s8 + $0x58] sm:$0xff] %v1870_v40 }
 0x5f7   :  { %1887 = vst [vmem:[%s3929_s8 + $0x60] sm:$0xff] %v1871_v41  ;;  %1888 = vst [vmem:[%s3929_s8 + $0x68] sm:$0xff] %v1872_v57 }
 0x5f8   :  { %1889 = vst [vmem:[%s3929_s8 + $0x70] sm:$0xff] %v1873_v56  ;;  %1890 = vst [vmem:[%s3929_s8 + $0x78] sm:$0xff] %v1874_v60 }

</bundles_post_ra>
